<compile_context>
chip_gen: v7x
topology: tpu7x:2x2x1
jax: 0.10.0
libtpu: 0.0.40
codegen_flags: <defaults>
</compile_context>

<pallas_src>
import jax
import jax.numpy as jnp
from jax.experimental import pallas as pl
from jax.experimental.pallas import tpu as pltpu


# ----------------------------- kernel ----------------------------------------


def _attention_gru_kernel(facts_ref, g_ref, wf_ref, bf_ref, uf_ref, bu_ref,
                          out_ref):
    """Fused attention-GRU forward.

    facts_ref: (B, S, E) f32 input facts (original layout, no transposes)
    g_ref    : (B, S)    f32 attention gates
    wf_ref   : (E, 2H)   fused fact weights [Wr | W]   (stored (in, out))
    bf_ref   : (1, 2H)   folded fact biases [bWr+bUr | bW]
    uf_ref   : (H, 2H)   fused recurrent weights [Ur | U]
    bu_ref   : (1, H)    U bias (must stay inside r * (U(C) + bU))
    out_ref  : (B, H)    final recurrent state C (written once)
    """
    B, S, E = facts_ref.shape
    H = out_ref.shape[1]

    # ---- Phase 1 (hoisted; loop-invariant w.r.t. C): project ALL facts ----
    # (B, S, E) -> (B*S, E) merges the leading batch dim into whole sublane
    # tiles (S == 8), so the reshape is a layout no-op; single MXU matmul with
    # M = B*S instead of S small matmuls inside the recurrence.
    facts2d = facts_ref[...].reshape(B * S, E)
    p = (
        jnp.dot(facts2d, wf_ref[...], preferred_element_type=jnp.float32)
        + bf_ref[...]
    ).reshape(B, S, 2 * H)          # rows: [Wr(f)+bWr+bUr | W(f)+bW]

    # ---- Hoisted loads (ref loads are stateful -> not CSE'd across steps) --
    g_all = g_ref[...]              # (B, S)
    uf = uf_ref[...]                # (H, 2H) fused [Ur | U], pinned in vregs
    bu = bu_ref[...]                # (1, H)

    # ---- Phase 2: sequential recurrence over sentences (static unroll) -----
    # TODO(synk): for large S, replace the full unroll with a sequential
    # S-chunk grid axis + carried VMEM C accumulator (pl.when init/finalize).
    C = jnp.zeros((B, H), jnp.float32)
    for s in range(S):              # S is small & static -> straight-line code
        pre = p[:, s, :]            # (B, 2H)   static slice
        g = g_all[:, s:s + 1]       # (B, 1) -> broadcasts over H
        # Single fused recurrent matmul per step: C @ [Ur | U].
        rec = jnp.dot(C, uf, preferred_element_type=jnp.float32)   # (B, 2H)
        r = jax.nn.sigmoid(pre[:, :H] + rec[:, :H])
        h_tilda = jnp.tanh(pre[:, H:] + r * (rec[:, H:] + bu))
        C = C + g * (h_tilda - C)   # == g*h~ + (1-g)*C, one fewer VPU mul
    out_ref[...] = C.astype(out_ref.dtype)


# ----------------------------- wrapper ----------------------------------------


def attention_gru(facts, G, params):
    """facts: (B, S, E) f32; G: (B, S) f32; returns C: (B, H) f32."""
    B, S, E = facts.shape
    H = params["Ur_t"].shape[0]

    # Fused weights / folded biases (stored (in, out) => plain x @ W).
    wf = jnp.concatenate([params["Wr_t"], params["W_t"]], axis=1)         # (E, 2H)
    bf = jnp.concatenate(
        [params["bWr"] + params["bUr"], params["bW"]], axis=1)            # (1, 2H)
    uf = jnp.concatenate([params["Ur_t"], params["U_t"]], axis=1)         # (H, 2H)
    bu = params["bU"]                                                     # (1, H)

    # Advisory cost hint for the XLA scheduler.
    flops = (2 * B * S * E * (2 * H)                # fact projection
             + S * (2 * B * H * (2 * H) + 10 * B * H))  # recurrence
    transcendentals = 2 * S * B * H                 # sigmoid + tanh
    bytes_accessed = 4 * (B * S * E + B * S + E * 2 * H + 2 * H
                          + H * 2 * H + H + B * H)

    vmem_spec = pl.BlockSpec(memory_space=pltpu.MemorySpace.VMEM)
    return pl.pallas_call(
        _attention_gru_kernel,
        out_shape=jax.ShapeDtypeStruct((B, H), jnp.float32),
        in_specs=[vmem_spec] * 6,
        out_specs=vmem_spec,
        cost_estimate=pl.CostEstimate(
            flops=flops,
            transcendentals=transcendentals,
            bytes_accessed=bytes_accessed),
    )(facts, G, wf, bf, uf, bu)


# ----------------------------- init + reference --------------------------------


def init_params(key, input_size, hidden_size):
    """Deterministic init mirroring the module: xavier_normal weights,
    PyTorch-Linear-default uniform biases. Weights stored as (in, out)."""
    ks = jax.random.split(key, 8)

    def xavier_normal_t(k, fan_in, fan_out):
        std = (2.0 / (fan_in + fan_out)) ** 0.5
        return std * jax.random.normal(k, (fan_in, fan_out), jnp.float32)

    def bias_uniform(k, fan_in, out):
        bound = 1.0 / (fan_in ** 0.5)
        return jax.random.uniform(k, (1, out), jnp.float32, -bound, bound)

    return {
        "Wr_t": xavier_normal_t(ks[0], input_size, hidden_size),
        "Ur_t": xavier_normal_t(ks[1], hidden_size, hidden_size),
        "W_t":  xavier_normal_t(ks[2], input_size, hidden_size),
        "U_t":  xavier_normal_t(ks[3], hidden_size, hidden_size),
        "bWr":  bias_uniform(ks[4], input_size, hidden_size),
        "bUr":  bias_uniform(ks[5], hidden_size, hidden_size),
        "bW":   bias_uniform(ks[6], input_size, hidden_size),
        "bU":   bias_uniform(ks[7], hidden_size, hidden_size),
    }


def attention_gru_reference(facts, G, params):
    """Pure-JAX reference of the PyTorch forward."""
    B, S, E = facts.shape
    H = params["Ur_t"].shape[0]
    C = jnp.zeros((B, H), jnp.float32)
    for sid in range(S):
        fact = facts[:, sid, :]
        g = G[:, sid][:, None]
        r = jax.nn.sigmoid(fact @ params["Wr_t"] + params["bWr"]
                           + C @ params["Ur_t"] + params["bUr"])
        h_tilda = jnp.tanh(fact @ params["W_t"] + params["bW"]
                           + r * (C @ params["U_t"] + params["bU"]))
        C = g * h_tilda + (1.0 - g) * C
    return C


# ----------------------------- main --------------------------------------------


if __name__ == "__main__":
    # The module's docstring asserts #hidden == #embedding, so E == H.
    B, S, H = 4, 8, 32
    key = jax.random.PRNGKey(0)
    k_facts, k_G, k_params = jax.random.split(key, 3)

    facts = jax.random.normal(k_facts, (B, S, H), jnp.float32)
    G = jax.nn.softmax(jax.random.normal(k_G, (B, S), jnp.float32), axis=-1)
    params = init_params(k_params, H, H)

    out = attention_gru(facts, G, params)
    out = jax.block_until_ready(out)

    ref = attention_gru_reference(facts, G, params)
    assert out.shape == (B, H)
    assert jnp.allclose(out, ref, atol=1e-5, rtol=1e-5), "mismatch vs reference"

    print("KERNEL_OK")
</pallas_src>

<mosaic_0001>
module attributes {stable_mosaic.version = 11 : i64} {
  func.func @_attention_gru_kernel(%arg0: memref<4x8x32xf32, #tpu.memory_space<vmem>>, %arg1: memref<4x8xf32, #tpu.memory_space<vmem>>, %arg2: memref<32x64xf32, #tpu.memory_space<vmem>>, %arg3: memref<1x64xf32, #tpu.memory_space<vmem>>, %arg4: memref<32x64xf32, #tpu.memory_space<vmem>>, %arg5: memref<1x32xf32, #tpu.memory_space<vmem>>, %arg6: memref<4x32xf32, #tpu.memory_space<vmem>>) attributes {dimension_semantics = [], scalar_prefetch = 0 : i64, scratch_operands = 0 : i64, tpu.core_type = #tpu.core_type<tc>} {
    %c0 = arith.constant 0 : index
    %c0_0 = arith.constant 0 : index
    %c0_1 = arith.constant 0 : index
    %0 = vector.load %arg0[%c0, %c0_0, %c0_1] : memref<4x8x32xf32, #tpu.memory_space<vmem>>, vector<4x8x32xf32>
    %1 = vector.shape_cast %0 : vector<4x8x32xf32> to vector<32x32xf32>
    %c0_2 = arith.constant 0 : index
    %c0_3 = arith.constant 0 : index
    %2 = vector.load %arg2[%c0_2, %c0_3] : memref<32x64xf32, #tpu.memory_space<vmem>>, vector<32x64xf32>
    %cst = arith.constant dense<0.000000e+00> : vector<32x64xf32>
    %3 = tpu.matmul %1, %2, %cst {dimension_numbers = #tpu.dot_dimension_numbers<[1], [0], [0], [1], [0, 0, 1, 1], [], []>} : vector<32x32xf32>, vector<32x64xf32>, vector<32x64xf32> -> vector<32x64xf32>
    %c0_4 = arith.constant 0 : index
    %c0_5 = arith.constant 0 : index
    %4 = vector.load %arg3[%c0_4, %c0_5] : memref<1x64xf32, #tpu.memory_space<vmem>>, vector<1x64xf32>
    %5 = vector.broadcast %4 : vector<1x64xf32> to vector<32x64xf32>
    %6 = arith.addf %3, %5 : vector<32x64xf32>
    %7 = vector.shape_cast %6 : vector<32x64xf32> to vector<4x8x64xf32>
    %c0_6 = arith.constant 0 : index
    %c0_7 = arith.constant 0 : index
    %8 = vector.load %arg1[%c0_6, %c0_7] : memref<4x8xf32, #tpu.memory_space<vmem>>, vector<4x8xf32>
    %c0_8 = arith.constant 0 : index
    %c0_9 = arith.constant 0 : index
    %9 = vector.load %arg4[%c0_8, %c0_9] : memref<32x64xf32, #tpu.memory_space<vmem>>, vector<32x64xf32>
    %c0_10 = arith.constant 0 : index
    %c0_11 = arith.constant 0 : index
    %10 = vector.load %arg5[%c0_10, %c0_11] : memref<1x32xf32, #tpu.memory_space<vmem>>, vector<1x32xf32>
    %cst_12 = arith.constant 0.000000e+00 : f32
    %11 = vector.broadcast %cst_12 : f32 to vector<4x32xf32>
    %12 = vector.extract_strided_slice %7 {offsets = [0, 0, 0], sizes = [4, 1, 64], strides = [1, 1, 1]} : vector<4x8x64xf32> to vector<4x1x64xf32>
    %13 = vector.shape_cast %12 : vector<4x1x64xf32> to vector<4x64xf32>
    %14 = vector.extract_strided_slice %8 {offsets = [0, 0], sizes = [4, 1], strides = [1, 1]} : vector<4x8xf32> to vector<4x1xf32>
    %cst_13 = arith.constant dense<0.000000e+00> : vector<4x64xf32>
    %15 = tpu.matmul %11, %9, %cst_13 {dimension_numbers = #tpu.dot_dimension_numbers<[1], [0], [0], [1], [0, 0, 1, 1], [], []>} : vector<4x32xf32>, vector<32x64xf32>, vector<4x64xf32> -> vector<4x64xf32>
    %16 = vector.extract_strided_slice %13 {offsets = [0, 0], sizes = [4, 32], strides = [1, 1]} : vector<4x64xf32> to vector<4x32xf32>
    %17 = vector.extract_strided_slice %15 {offsets = [0, 0], sizes = [4, 32], strides = [1, 1]} : vector<4x64xf32> to vector<4x32xf32>
    %18 = arith.addf %16, %17 : vector<4x32xf32>
    %19 = arith.negf %18 : vector<4x32xf32>
    %20 = math.exp %19 : vector<4x32xf32>
    %cst_14 = arith.constant 1.000000e+00 : f32
    %21 = vector.broadcast %cst_14 : f32 to vector<4x32xf32>
    %22 = arith.addf %21, %20 : vector<4x32xf32>
    %23 = arith.divf %21, %22 : vector<4x32xf32>
    %24 = vector.extract_strided_slice %13 {offsets = [0, 32], sizes = [4, 32], strides = [1, 1]} : vector<4x64xf32> to vector<4x32xf32>
    %25 = vector.extract_strided_slice %15 {offsets = [0, 32], sizes = [4, 32], strides = [1, 1]} : vector<4x64xf32> to vector<4x32xf32>
    %26 = vector.broadcast %10 : vector<1x32xf32> to vector<4x32xf32>
    %27 = arith.addf %25, %26 : vector<4x32xf32>
    %28 = arith.mulf %23, %27 : vector<4x32xf32>
    %29 = arith.addf %24, %28 : vector<4x32xf32>
    %30 = math.tanh %29 : vector<4x32xf32>
    %31 = arith.subf %30, %11 : vector<4x32xf32>
    %32 = vector.broadcast %14 : vector<4x1xf32> to vector<4x32xf32>
    %33 = arith.mulf %32, %31 : vector<4x32xf32>
    %34 = arith.addf %11, %33 : vector<4x32xf32>
    %35 = vector.extract_strided_slice %7 {offsets = [0, 1, 0], sizes = [4, 1, 64], strides = [1, 1, 1]} : vector<4x8x64xf32> to vector<4x1x64xf32>
    %36 = vector.shape_cast %35 : vector<4x1x64xf32> to vector<4x64xf32>
    %37 = vector.extract_strided_slice %8 {offsets = [0, 1], sizes = [4, 1], strides = [1, 1]} : vector<4x8xf32> to vector<4x1xf32>
    %cst_15 = arith.constant dense<0.000000e+00> : vector<4x64xf32>
    %38 = tpu.matmul %34, %9, %cst_15 {dimension_numbers = #tpu.dot_dimension_numbers<[1], [0], [0], [1], [0, 0, 1, 1], [], []>} : vector<4x32xf32>, vector<32x64xf32>, vector<4x64xf32> -> vector<4x64xf32>
    %39 = vector.extract_strided_slice %36 {offsets = [0, 0], sizes = [4, 32], strides = [1, 1]} : vector<4x64xf32> to vector<4x32xf32>
    %40 = vector.extract_strided_slice %38 {offsets = [0, 0], sizes = [4, 32], strides = [1, 1]} : vector<4x64xf32> to vector<4x32xf32>
    %41 = arith.addf %39, %40 : vector<4x32xf32>
    %42 = arith.negf %41 : vector<4x32xf32>
    %43 = math.exp %42 : vector<4x32xf32>
    %cst_16 = arith.constant 1.000000e+00 : f32
    %44 = vector.broadcast %cst_16 : f32 to vector<4x32xf32>
    %45 = arith.addf %44, %43 : vector<4x32xf32>
    %46 = arith.divf %44, %45 : vector<4x32xf32>
    %47 = vector.extract_strided_slice %36 {offsets = [0, 32], sizes = [4, 32], strides = [1, 1]} : vector<4x64xf32> to vector<4x32xf32>
    %48 = vector.extract_strided_slice %38 {offsets = [0, 32], sizes = [4, 32], strides = [1, 1]} : vector<4x64xf32> to vector<4x32xf32>
    %49 = vector.broadcast %10 : vector<1x32xf32> to vector<4x32xf32>
    %50 = arith.addf %48, %49 : vector<4x32xf32>
    %51 = arith.mulf %46, %50 : vector<4x32xf32>
    %52 = arith.addf %47, %51 : vector<4x32xf32>
    %53 = math.tanh %52 : vector<4x32xf32>
    %54 = arith.subf %53, %34 : vector<4x32xf32>
    %55 = vector.broadcast %37 : vector<4x1xf32> to vector<4x32xf32>
    %56 = arith.mulf %55, %54 : vector<4x32xf32>
    %57 = arith.addf %34, %56 : vector<4x32xf32>
    %58 = vector.extract_strided_slice %7 {offsets = [0, 2, 0], sizes = [4, 1, 64], strides = [1, 1, 1]} : vector<4x8x64xf32> to vector<4x1x64xf32>
    %59 = vector.shape_cast %58 : vector<4x1x64xf32> to vector<4x64xf32>
    %60 = vector.extract_strided_slice %8 {offsets = [0, 2], sizes = [4, 1], strides = [1, 1]} : vector<4x8xf32> to vector<4x1xf32>
    %cst_17 = arith.constant dense<0.000000e+00> : vector<4x64xf32>
    %61 = tpu.matmul %57, %9, %cst_17 {dimension_numbers = #tpu.dot_dimension_numbers<[1], [0], [0], [1], [0, 0, 1, 1], [], []>} : vector<4x32xf32>, vector<32x64xf32>, vector<4x64xf32> -> vector<4x64xf32>
    %62 = vector.extract_strided_slice %59 {offsets = [0, 0], sizes = [4, 32], strides = [1, 1]} : vector<4x64xf32> to vector<4x32xf32>
    %63 = vector.extract_strided_slice %61 {offsets = [0, 0], sizes = [4, 32], strides = [1, 1]} : vector<4x64xf32> to vector<4x32xf32>
    %64 = arith.addf %62, %63 : vector<4x32xf32>
    %65 = arith.negf %64 : vector<4x32xf32>
    %66 = math.exp %65 : vector<4x32xf32>
    %cst_18 = arith.constant 1.000000e+00 : f32
    %67 = vector.broadcast %cst_18 : f32 to vector<4x32xf32>
    %68 = arith.addf %67, %66 : vector<4x32xf32>
    %69 = arith.divf %67, %68 : vector<4x32xf32>
    %70 = vector.extract_strided_slice %59 {offsets = [0, 32], sizes = [4, 32], strides = [1, 1]} : vector<4x64xf32> to vector<4x32xf32>
    %71 = vector.extract_strided_slice %61 {offsets = [0, 32], sizes = [4, 32], strides = [1, 1]} : vector<4x64xf32> to vector<4x32xf32>
    %72 = vector.broadcast %10 : vector<1x32xf32> to vector<4x32xf32>
    %73 = arith.addf %71, %72 : vector<4x32xf32>
    %74 = arith.mulf %69, %73 : vector<4x32xf32>
    %75 = arith.addf %70, %74 : vector<4x32xf32>
    %76 = math.tanh %75 : vector<4x32xf32>
    %77 = arith.subf %76, %57 : vector<4x32xf32>
    %78 = vector.broadcast %60 : vector<4x1xf32> to vector<4x32xf32>
    %79 = arith.mulf %78, %77 : vector<4x32xf32>
    %80 = arith.addf %57, %79 : vector<4x32xf32>
    %81 = vector.extract_strided_slice %7 {offsets = [0, 3, 0], sizes = [4, 1, 64], strides = [1, 1, 1]} : vector<4x8x64xf32> to vector<4x1x64xf32>
    %82 = vector.shape_cast %81 : vector<4x1x64xf32> to vector<4x64xf32>
    %83 = vector.extract_strided_slice %8 {offsets = [0, 3], sizes = [4, 1], strides = [1, 1]} : vector<4x8xf32> to vector<4x1xf32>
    %cst_19 = arith.constant dense<0.000000e+00> : vector<4x64xf32>
    %84 = tpu.matmul %80, %9, %cst_19 {dimension_numbers = #tpu.dot_dimension_numbers<[1], [0], [0], [1], [0, 0, 1, 1], [], []>} : vector<4x32xf32>, vector<32x64xf32>, vector<4x64xf32> -> vector<4x64xf32>
    %85 = vector.extract_strided_slice %82 {offsets = [0, 0], sizes = [4, 32], strides = [1, 1]} : vector<4x64xf32> to vector<4x32xf32>
    %86 = vector.extract_strided_slice %84 {offsets = [0, 0], sizes = [4, 32], strides = [1, 1]} : vector<4x64xf32> to vector<4x32xf32>
    %87 = arith.addf %85, %86 : vector<4x32xf32>
    %88 = arith.negf %87 : vector<4x32xf32>
    %89 = math.exp %88 : vector<4x32xf32>
    %cst_20 = arith.constant 1.000000e+00 : f32
    %90 = vector.broadcast %cst_20 : f32 to vector<4x32xf32>
    %91 = arith.addf %90, %89 : vector<4x32xf32>
    %92 = arith.divf %90, %91 : vector<4x32xf32>
    %93 = vector.extract_strided_slice %82 {offsets = [0, 32], sizes = [4, 32], strides = [1, 1]} : vector<4x64xf32> to vector<4x32xf32>
    %94 = vector.extract_strided_slice %84 {offsets = [0, 32], sizes = [4, 32], strides = [1, 1]} : vector<4x64xf32> to vector<4x32xf32>
    %95 = vector.broadcast %10 : vector<1x32xf32> to vector<4x32xf32>
    %96 = arith.addf %94, %95 : vector<4x32xf32>
    %97 = arith.mulf %92, %96 : vector<4x32xf32>
    %98 = arith.addf %93, %97 : vector<4x32xf32>
    %99 = math.tanh %98 : vector<4x32xf32>
    %100 = arith.subf %99, %80 : vector<4x32xf32>
    %101 = vector.broadcast %83 : vector<4x1xf32> to vector<4x32xf32>
    %102 = arith.mulf %101, %100 : vector<4x32xf32>
    %103 = arith.addf %80, %102 : vector<4x32xf32>
    %104 = vector.extract_strided_slice %7 {offsets = [0, 4, 0], sizes = [4, 1, 64], strides = [1, 1, 1]} : vector<4x8x64xf32> to vector<4x1x64xf32>
    %105 = vector.shape_cast %104 : vector<4x1x64xf32> to vector<4x64xf32>
    %106 = vector.extract_strided_slice %8 {offsets = [0, 4], sizes = [4, 1], strides = [1, 1]} : vector<4x8xf32> to vector<4x1xf32>
    %cst_21 = arith.constant dense<0.000000e+00> : vector<4x64xf32>
    %107 = tpu.matmul %103, %9, %cst_21 {dimension_numbers = #tpu.dot_dimension_numbers<[1], [0], [0], [1], [0, 0, 1, 1], [], []>} : vector<4x32xf32>, vector<32x64xf32>, vector<4x64xf32> -> vector<4x64xf32>
    %108 = vector.extract_strided_slice %105 {offsets = [0, 0], sizes = [4, 32], strides = [1, 1]} : vector<4x64xf32> to vector<4x32xf32>
    %109 = vector.extract_strided_slice %107 {offsets = [0, 0], sizes = [4, 32], strides = [1, 1]} : vector<4x64xf32> to vector<4x32xf32>
    %110 = arith.addf %108, %109 : vector<4x32xf32>
    %111 = arith.negf %110 : vector<4x32xf32>
    %112 = math.exp %111 : vector<4x32xf32>
    %cst_22 = arith.constant 1.000000e+00 : f32
    %113 = vector.broadcast %cst_22 : f32 to vector<4x32xf32>
    %114 = arith.addf %113, %112 : vector<4x32xf32>
    %115 = arith.divf %113, %114 : vector<4x32xf32>
    %116 = vector.extract_strided_slice %105 {offsets = [0, 32], sizes = [4, 32], strides = [1, 1]} : vector<4x64xf32> to vector<4x32xf32>
    %117 = vector.extract_strided_slice %107 {offsets = [0, 32], sizes = [4, 32], strides = [1, 1]} : vector<4x64xf32> to vector<4x32xf32>
    %118 = vector.broadcast %10 : vector<1x32xf32> to vector<4x32xf32>
    %119 = arith.addf %117, %118 : vector<4x32xf32>
    %120 = arith.mulf %115, %119 : vector<4x32xf32>
    %121 = arith.addf %116, %120 : vector<4x32xf32>
    %122 = math.tanh %121 : vector<4x32xf32>
    %123 = arith.subf %122, %103 : vector<4x32xf32>
    %124 = vector.broadcast %106 : vector<4x1xf32> to vector<4x32xf32>
    %125 = arith.mulf %124, %123 : vector<4x32xf32>
    %126 = arith.addf %103, %125 : vector<4x32xf32>
    %127 = vector.extract_strided_slice %7 {offsets = [0, 5, 0], sizes = [4, 1, 64], strides = [1, 1, 1]} : vector<4x8x64xf32> to vector<4x1x64xf32>
    %128 = vector.shape_cast %127 : vector<4x1x64xf32> to vector<4x64xf32>
    %129 = vector.extract_strided_slice %8 {offsets = [0, 5], sizes = [4, 1], strides = [1, 1]} : vector<4x8xf32> to vector<4x1xf32>
    %cst_23 = arith.constant dense<0.000000e+00> : vector<4x64xf32>
    %130 = tpu.matmul %126, %9, %cst_23 {dimension_numbers = #tpu.dot_dimension_numbers<[1], [0], [0], [1], [0, 0, 1, 1], [], []>} : vector<4x32xf32>, vector<32x64xf32>, vector<4x64xf32> -> vector<4x64xf32>
    %131 = vector.extract_strided_slice %128 {offsets = [0, 0], sizes = [4, 32], strides = [1, 1]} : vector<4x64xf32> to vector<4x32xf32>
    %132 = vector.extract_strided_slice %130 {offsets = [0, 0], sizes = [4, 32], strides = [1, 1]} : vector<4x64xf32> to vector<4x32xf32>
    %133 = arith.addf %131, %132 : vector<4x32xf32>
    %134 = arith.negf %133 : vector<4x32xf32>
    %135 = math.exp %134 : vector<4x32xf32>
    %cst_24 = arith.constant 1.000000e+00 : f32
    %136 = vector.broadcast %cst_24 : f32 to vector<4x32xf32>
    %137 = arith.addf %136, %135 : vector<4x32xf32>
    %138 = arith.divf %136, %137 : vector<4x32xf32>
    %139 = vector.extract_strided_slice %128 {offsets = [0, 32], sizes = [4, 32], strides = [1, 1]} : vector<4x64xf32> to vector<4x32xf32>
    %140 = vector.extract_strided_slice %130 {offsets = [0, 32], sizes = [4, 32], strides = [1, 1]} : vector<4x64xf32> to vector<4x32xf32>
    %141 = vector.broadcast %10 : vector<1x32xf32> to vector<4x32xf32>
    %142 = arith.addf %140, %141 : vector<4x32xf32>
    %143 = arith.mulf %138, %142 : vector<4x32xf32>
    %144 = arith.addf %139, %143 : vector<4x32xf32>
    %145 = math.tanh %144 : vector<4x32xf32>
    %146 = arith.subf %145, %126 : vector<4x32xf32>
    %147 = vector.broadcast %129 : vector<4x1xf32> to vector<4x32xf32>
    %148 = arith.mulf %147, %146 : vector<4x32xf32>
    %149 = arith.addf %126, %148 : vector<4x32xf32>
    %150 = vector.extract_strided_slice %7 {offsets = [0, 6, 0], sizes = [4, 1, 64], strides = [1, 1, 1]} : vector<4x8x64xf32> to vector<4x1x64xf32>
    %151 = vector.shape_cast %150 : vector<4x1x64xf32> to vector<4x64xf32>
    %152 = vector.extract_strided_slice %8 {offsets = [0, 6], sizes = [4, 1], strides = [1, 1]} : vector<4x8xf32> to vector<4x1xf32>
    %cst_25 = arith.constant dense<0.000000e+00> : vector<4x64xf32>
    %153 = tpu.matmul %149, %9, %cst_25 {dimension_numbers = #tpu.dot_dimension_numbers<[1], [0], [0], [1], [0, 0, 1, 1], [], []>} : vector<4x32xf32>, vector<32x64xf32>, vector<4x64xf32> -> vector<4x64xf32>
    %154 = vector.extract_strided_slice %151 {offsets = [0, 0], sizes = [4, 32], strides = [1, 1]} : vector<4x64xf32> to vector<4x32xf32>
    %155 = vector.extract_strided_slice %153 {offsets = [0, 0], sizes = [4, 32], strides = [1, 1]} : vector<4x64xf32> to vector<4x32xf32>
    %156 = arith.addf %154, %155 : vector<4x32xf32>
    %157 = arith.negf %156 : vector<4x32xf32>
    %158 = math.exp %157 : vector<4x32xf32>
    %cst_26 = arith.constant 1.000000e+00 : f32
    %159 = vector.broadcast %cst_26 : f32 to vector<4x32xf32>
    %160 = arith.addf %159, %158 : vector<4x32xf32>
    %161 = arith.divf %159, %160 : vector<4x32xf32>
    %162 = vector.extract_strided_slice %151 {offsets = [0, 32], sizes = [4, 32], strides = [1, 1]} : vector<4x64xf32> to vector<4x32xf32>
    %163 = vector.extract_strided_slice %153 {offsets = [0, 32], sizes = [4, 32], strides = [1, 1]} : vector<4x64xf32> to vector<4x32xf32>
    %164 = vector.broadcast %10 : vector<1x32xf32> to vector<4x32xf32>
    %165 = arith.addf %163, %164 : vector<4x32xf32>
    %166 = arith.mulf %161, %165 : vector<4x32xf32>
    %167 = arith.addf %162, %166 : vector<4x32xf32>
    %168 = math.tanh %167 : vector<4x32xf32>
    %169 = arith.subf %168, %149 : vector<4x32xf32>
    %170 = vector.broadcast %152 : vector<4x1xf32> to vector<4x32xf32>
    %171 = arith.mulf %170, %169 : vector<4x32xf32>
    %172 = arith.addf %149, %171 : vector<4x32xf32>
    %173 = vector.extract_strided_slice %7 {offsets = [0, 7, 0], sizes = [4, 1, 64], strides = [1, 1, 1]} : vector<4x8x64xf32> to vector<4x1x64xf32>
    %174 = vector.shape_cast %173 : vector<4x1x64xf32> to vector<4x64xf32>
    %175 = vector.extract_strided_slice %8 {offsets = [0, 7], sizes = [4, 1], strides = [1, 1]} : vector<4x8xf32> to vector<4x1xf32>
    %cst_27 = arith.constant dense<0.000000e+00> : vector<4x64xf32>
    %176 = tpu.matmul %172, %9, %cst_27 {dimension_numbers = #tpu.dot_dimension_numbers<[1], [0], [0], [1], [0, 0, 1, 1], [], []>} : vector<4x32xf32>, vector<32x64xf32>, vector<4x64xf32> -> vector<4x64xf32>
    %177 = vector.extract_strided_slice %174 {offsets = [0, 0], sizes = [4, 32], strides = [1, 1]} : vector<4x64xf32> to vector<4x32xf32>
    %178 = vector.extract_strided_slice %176 {offsets = [0, 0], sizes = [4, 32], strides = [1, 1]} : vector<4x64xf32> to vector<4x32xf32>
    %179 = arith.addf %177, %178 : vector<4x32xf32>
    %180 = arith.negf %179 : vector<4x32xf32>
    %181 = math.exp %180 : vector<4x32xf32>
    %cst_28 = arith.constant 1.000000e+00 : f32
    %182 = vector.broadcast %cst_28 : f32 to vector<4x32xf32>
    %183 = arith.addf %182, %181 : vector<4x32xf32>
    %184 = arith.divf %182, %183 : vector<4x32xf32>
    %185 = vector.extract_strided_slice %174 {offsets = [0, 32], sizes = [4, 32], strides = [1, 1]} : vector<4x64xf32> to vector<4x32xf32>
    %186 = vector.extract_strided_slice %176 {offsets = [0, 32], sizes = [4, 32], strides = [1, 1]} : vector<4x64xf32> to vector<4x32xf32>
    %187 = vector.broadcast %10 : vector<1x32xf32> to vector<4x32xf32>
    %188 = arith.addf %186, %187 : vector<4x32xf32>
    %189 = arith.mulf %184, %188 : vector<4x32xf32>
    %190 = arith.addf %185, %189 : vector<4x32xf32>
    %191 = math.tanh %190 : vector<4x32xf32>
    %192 = arith.subf %191, %172 : vector<4x32xf32>
    %193 = vector.broadcast %175 : vector<4x1xf32> to vector<4x32xf32>
    %194 = arith.mulf %193, %192 : vector<4x32xf32>
    %195 = arith.addf %172, %194 : vector<4x32xf32>
    %c0_29 = arith.constant 0 : index
    %c0_30 = arith.constant 0 : index
    %196 = vector.load %arg6[%c0_29, %c0_30] : memref<4x32xf32, #tpu.memory_space<vmem>>, vector<4x32xf32>
    tpu.vector_store %arg6[%c0_29, %c0_30], %195 {strides = array<i32>} : memref<4x32xf32, #tpu.memory_space<vmem>>, vector<4x32xf32>,
    return
  }
}

</mosaic_0001>

<bundles_post_ra>
// kernel: tpu_custom_call.1
= control target key start
LH: loop header
LB: loop body
LE: loop exit
PB: predicated region body
PF: predicated region fallthrough
CT: control target
= control target key end

     0   :  { %11 = vsyncpa [#allocation3], 0  ;;  %s2834_s0 = inlined_call_operand.hbm [shape: f32[4,8,32], index: 0, kind: input, shape index: {}]   ;;  %s2835_s1 = inlined_call_operand.hbm [shape: f32[4,8], index: 1, kind: input, shape index: {}]   ;;  %s2836_s2 = inlined_call_operand.hbm [shape: f32[32,64], index: 2, kind: input, shape index: {}]   ;;  %s2837_s3 = inlined_call_operand.vmem [shape: f32[1,64], index: 3, kind: input, shape index: {}]   ;;  %s2838_s4 = inlined_call_operand.hbm [shape: f32[32,64], index: 4, kind: input, shape index: {}]   ;;  %s2839_s5 = inlined_call_operand.vmem [shape: f32[1,32], index: 5, kind: input, shape index: {}]   ;;  %s2840_s6 = inlined_call_operand.hbm [shape: f32[4,32], index: 6, kind: output, shape index: {}]  }
   0x1   :  { %12 = vsyncpa [#allocation6], 0 }
   0x2   :  { %13 = vsyncpa [#allocation9], 0 }
   0x3   :  { %14 = vsyncpa [#allocation4], 0  ;;  %s2351_s21 = smov [#allocation5]   ;;  %s2352_s23 = smov [#allocation2]  }
   0x4   :  { %s33_s22 = sshll.u32 %s2351_s21, 4  ;;  %s20_s24 = sshll.u32 %s2352_s23, 4  ;;  %s34_s22 = int_to_ptr.vmem [resolvable:$true] %s33_s22  ;;  %s2406_s24 = int_to_ptr.vmem [resolvable:$true] %s20_s24 }
   0x5   :  { %s2233_s27 = scalar_lea.hbm %s2835_s1, 64 }
   0x6   :  { %p2234_p0 = scmp.ne.s32.totalorder %s2835_s1, %s2233_s27  ;;  %p2237_p1 = scmp.lt.u32.totalorder %s2233_s27, %s2835_s1 }
   0x8   :  { %p2239_p2 = pnand %p2237_p1, %p2234_p0 }
   0xa   :  { %2242 = shalt.err (!%p2239_p2)
}
   0xb   :  { %s2243_s8 = scalar_lea.vmem %s34_s22, 64  ;;  %p2248_p4 = scmp.lt.s32.totalorder %s34_s22, %s34_s22 }
   0xc   :  { %p2244_p3 = scmp.ne.s32.totalorder %s34_s22, %s2243_s8  ;;  %p2249_p5 = scmp.lt.s32.totalorder %s2243_s8, %s2243_s8 }
   0xe   :  { %p2250_p6 = por %p2249_p5, %p2248_p4 }
  0x10   :  { %p2251_p7 = pnand %p2250_p6, %p2244_p3 }
  0x12   :  { %2254 = shalt.err (!%p2251_p7)
}
  0x13   :  { %36 = dma.hbm_to_vmem [thread:$0]  %s2835_s1, 64, %s34_s22, [#allocation6]  }
  0x14   :  { %s2255_s13 = scalar_lea.hbm %s2834_s0, 512 }
  0x15   :  { %p2256_p8 = scmp.ne.s32.totalorder %s2834_s0, %s2255_s13  ;;  %p2259_p9 = scmp.lt.u32.totalorder %s2255_s13, %s2834_s0 }
  0x17   :  { %p2261_p10 = pnand %p2259_p9, %p2256_p8 }
  0x19   :  { %2264 = shalt.err (!%p2261_p10)
}
  0x1a   :  { %s2265_s18 = scalar_lea.vmem %s2406_s24, 512  ;;  %p2270_p12 = scmp.lt.s32.totalorder %s2406_s24, %s2406_s24 }
  0x1b   :  { %p2266_p11 = scmp.ne.s32.totalorder %s2406_s24, %s2265_s18  ;;  %p2271_p13 = scmp.lt.s32.totalorder %s2265_s18, %s2265_s18 }
  0x1d   :  { %p2272_p0 = por %p2271_p13, %p2270_p12 }
  0x1f   :  { %p2273_p1 = pnand %p2272_p0, %p2266_p11 }
  0x21   :  { %2276 = shalt.err (!%p2273_p1)
}
  0x22   :  { %s2353_s1 = smov 128   ;;  %s2354_s19 = smov 8  }
  0x23   :  { %26 = dma.hbm_to_vmem [thread:$0]  %s2834_s0, 512, %s2406_s24, [#allocation3], %s2353_s1, %s2353_s1, %s2354_s19  }
  0x24   :  { %s2355_s22 = smov [#allocation7]   ;;  %s2356_s25 = smov [#allocation8]  }
  0x25   :  { %s42_s23 = sshll.u32 %s2355_s22, 4  ;;  %s56_s26 = sshll.u32 %s2356_s25, 4  ;;  %s43_s23 = int_to_ptr.vmem [resolvable:$true] %s42_s23  ;;  %s2440_s26 = int_to_ptr.vmem [resolvable:$true] %s56_s26 }
  0x26   :  { %s2277_s29 = scalar_lea.hbm %s2836_s2, 512 }
  0x27   :  { %p2278_p2 = scmp.ne.s32.totalorder %s2836_s2, %s2277_s29  ;;  %p2281_p3 = scmp.lt.u32.totalorder %s2277_s29, %s2836_s2 }
  0x29   :  { %p2283_p4 = pnand %p2281_p3, %p2278_p2 }
  0x2b   :  { %2286 = shalt.err (!%p2283_p4)
}
  0x2c   :  { %s2287_s0 = scalar_lea.vmem %s43_s23, 512  ;;  %p2292_p6 = scmp.lt.s32.totalorder %s43_s23, %s43_s23 }
  0x2d   :  { %p2288_p5 = scmp.ne.s32.totalorder %s43_s23, %s2287_s0  ;;  %p2293_p7 = scmp.lt.s32.totalorder %s2287_s0, %s2287_s0 }
  0x2f   :  { %p2294_p8 = por %p2293_p7, %p2292_p6 }
  0x31   :  { %p2295_p9 = pnand %p2294_p8, %p2288_p5 }
  0x33   :  { %2298 = shalt.err (!%p2295_p9)
}
  0x34   :  { %48 = dma.hbm_to_vmem [thread:$0]  %s2836_s2, 512, %s43_s23, [#allocation6], %s2353_s1, %s2353_s1, %s2354_s19  }
  0x35   :  { %s2299_s13 = scalar_lea.hbm %s2838_s4, 512 }
  0x36   :  { %p2300_p10 = scmp.ne.s32.totalorder %s2838_s4, %s2299_s13  ;;  %p2303_p11 = scmp.lt.u32.totalorder %s2299_s13, %s2838_s4 }
  0x38   :  { %p2305_p12 = pnand %p2303_p11, %p2300_p10 }
  0x3a   :  { %2308 = shalt.err (!%p2305_p12)
}
  0x3b   :  { %s2309_s18 = scalar_lea.vmem %s2440_s26, 512  ;;  %p2314_p0 = scmp.lt.s32.totalorder %s2440_s26, %s2440_s26 }
  0x3c   :  { %p2310_p13 = scmp.ne.s32.totalorder %s2440_s26, %s2309_s18  ;;  %p2315_p1 = scmp.lt.s32.totalorder %s2309_s18, %s2309_s18 }
  0x3e   :  { %p2316_p2 = por %p2315_p1, %p2314_p0 }
  0x40   :  { %p2317_p3 = pnand %p2316_p2, %p2310_p13 }
  0x42   :  { %2320 = shalt.err (!%p2317_p3)
}
  0x43   :  { %62 = dma.hbm_to_vmem [thread:$0]  %s2838_s4, 512, %s2440_s26, [#allocation9], %s2353_s1, %s2353_s1, %s2354_s19  }
  0x44   :  { %2343 = dma.done.wait [#allocation3], 512  }
  0x45   :  { %2344 = vsyncadd [#allocation3], 4294966784 }
  0x46   :  { %2345 = dma.done.wait [#allocation6], 576  }
  0x47   :  { %2346 = vsyncadd [#allocation6], 4294966720 }
  0x48   :  { %2347 = dma.done.wait [#allocation9], 512  }
  0x49   :  { %2348 = vsyncadd [#allocation9], 4294966784  ;;  %v2357_v0 = vmov 0.0|0.0   ;;  %vm2358_vm0 = vmmov 0   ;;  %v2359_v1 = vmov 0.0   ;;  %v81_v2 = vld [vmem:[#allocation7] sm:$0xff] }
  0x4a   :  { %1963 = vmatprep.subr.bf16.mxu1 %v2357_v0  ;;  %1875 = vmatprep.mubr.msk.f32.mxu1 %vm2358_vm0, %v2359_v1  ;;  %v82_v3 = vld [vmem:[#allocation7 + $0x8] sm:$0xff]  ;;  %v191_v4 = vld [vmem:[#allocation8] sm:$0xff]  ;;  %vm92_vm1 = vcmask 261120   ;;  %v83_v7 = vld [vmem:[#allocation7 + $0x10] sm:$0xff]  ;;  %s2360_s19 = smov 32   ;;  %v2362_v54 = vmov 0  }
  0x4b   :  { %v1955_v5 = vpack.c.bf16 %v82_v3, %v81_v2  ;;  %v192_v6 = vld [vmem:[#allocation8 + $0x8] sm:$0xff]  ;;  %v84_v8 = vld [vmem:[#allocation7 + $0x18] sm:$0xff]  ;;  %v193_v11 = vld [vmem:[#allocation8 + $0x10] sm:$0xff]  ;;  %2031 = vset.pattern.permute.xlu1 %v2362_v54  ;;  %vm368_vm2 = vcmask 1041409   ;;  %vm371_vm3 = vcmask 1042434   ;;  %vm374_vm4 = vcmask 1043459  }
  0x4c   :  { %v2480_v9 = vpack.c.bf16 %v192_v6, %v191_v4  ;;  %v1959_v10 = vpack.c.bf16 %v84_v8, %v83_v7  ;;  %v194_v12 = vld [vmem:[#allocation8 + $0x18] sm:$0xff]  ;;  %v78_v16 = vld [vmem:[#allocation2 + $0x8] sm:$0xff]  ;;  %v79_v17 = vld [vmem:[#allocation2 + $0x10] sm:$0xff]  ;;  %vm1741_vm5 = vcmask 257024  }
  0x4d   :  { %v77_v13 = vld [vmem:[#allocation2] sm:$0xff]  ;;  %1956 = vmatprep.subr.bf16.mxu0 %v1955_v5  ;;  %v2484_v14 = vpack.c.bf16 %v194_v12, %v193_v11  ;;  %v80_v18 = vld [vmem:[#allocation2 + $0x18] sm:$0xff] }
  0x4e   :  { %1861 = vmatprep.mubr.msk.f32.mxu0 %vm92_vm1, %v77_v13  ;;  %1965 = vmatpush3.bf16.msra.mxu1 %v2480_v9  ;;  %v1769_v15 = vld [vmem:[%s2839_s5] ss:$0 sm:$0xff]  ;;  %s2361_s5 = smov 96  }
  0x4f   :  { %1958 = vmatpush3.bf16.msra.mxu0 %v1955_v5  ;;  %1966 = vmatprep.subr.bf16.mxu1 %v2357_v0  ;;  %v1760_v30 = vld [vmem:[%s2837_s3] ss:$0 sm:$0xff]  ;;  %s2370_s3 = smov [#allocation10]  }
  0x50   :  { %1960 = vmatprep.subr.bf16.mxu0 %v1959_v10  ;;  %310 = vrot.lane.b32.xlu0 %v1769_v15, %s2360_s19  ;;  %v2536_v5 = vld [vmem:[#allocation5] sm:$0xf]  ;;  %s1749_s23 = sshll.u32 %s2370_s3, 4  ;;  %s1750_s23 = int_to_ptr.vmem [resolvable:$true] %s1749_s23 }
  0x51   :  { %s2321_s25 = scalar_lea.vmem %s1750_s23, 64  ;;  %p2326_p5 = scmp.lt.s32.totalorder %s1750_s23, %s1750_s23 }
  0x52   :  { %1968 = vmatpush3.bf16.msra.mxu1 %v2484_v14  ;;  %p2322_p4 = scmp.ne.s32.totalorder %s1750_s23, %s2321_s25  ;;  %p2327_p6 = scmp.lt.s32.totalorder %s2321_s25, %s2321_s25 }
  0x53   :  { %1962 = vmatpush3.bf16.msra.mxu0 %v1959_v10  ;;  %1975 = vmatprep.subr.bf16.mxu1 %v2357_v0 }
  0x54   :  { %1969 = vmatprep.subr.bf16.mxu0 %v2357_v0  ;;  %p2328_p7 = por %p2327_p6, %p2326_p5 }
  0x55   :  { %1876 = vmatmul.mubr.f32.vlgmr.msra.gmra.mrb[0].mxu1 %v2359_v1 }
  0x56   :  { %1862 = vmatmul.mubr.msk.f32.vlgmr.msra.gmra.mrb[0].mxu0 %vm92_vm1, %v78_v16  ;;  %1977 = vmatpush3.bf16.msra.mxu1 %v2480_v9  ;;  %p2329_p8 = pnand %p2328_p7, %p2322_p4 }
  0x57   :  { %1864 = vmatprep.mubr.msk.f32.mxu0 %vm92_vm1, %v79_v17  ;;  %1971 = vmatpush3.bf16.msra.mxu0 %v2480_v9 }
  0x58   :  { %1972 = vmatprep.subr.bf16.mxu0 %v2357_v0  ;;  %1978 = vmatprep.subr.bf16.mxu1 %v2357_v0 }
  0x59   :  { %1897 = vmatprep.mubr.msk.f32.mxu1 %vm2358_vm0, %v2359_v1 }
  0x5a   :  { %1865 = vmatmul.mubr.msk.f32.gmra.mrb[2].mxu0 %vm92_vm1, %v80_v18  ;;  %1980 = vmatpush3.bf16.msra.mxu1 %v2484_v14 }
  0x5b   :  { %1974 = vmatpush3.bf16.msra.mxu0 %v2484_v14  ;;  %1886 = vmatprep.mubr.msk.f32.mxu0 %vm2358_vm0, %v2359_v1 }
  0x5c   :  { %1981 = vmatprep.subr.bf16.mxu0 %v2357_v0  ;;  %1987 = vmatprep.subr.bf16.mxu1 %v2357_v0 }
  0xc2   :  { %v2510_v19 = vpop.permute.xlu0 %310 }
 0x128   :  { %v265_v20 = vpop.f32.mrb[0].mxu1 }
 0x129   :  { %v1863_v21 = vpop.f32.mrb[0].mxu0  ;;  %v313_v22 = vadd.f32 %v2510_v19, %v265_v20  ;;  %v1877_v23 = vpop.f32.mrb[1].mxu1  ;;  %v270_v31 = vrot.slane %v265_v20, 1  ;;  %v271_v34 = vrot.slane %v265_v20, 2  ;;  %v272_v39 = vrot.slane %v265_v20, 3 }
 0x12a   :  { %v171_v24 = vpop.f32.mrb[1].mxu0  ;;  %v2520_v32 = vadd.f32 %v1863_v21, %v1760_v30 }
 0x12b   :  { %v316_v25 = vrot.slane %v313_v22, 2  ;;  %v315_v26 = vrot.slane %v313_v22, 1  ;;  %v317_v29 = vrot.slane %v313_v22, 3  ;;  %v2524_v35 = vadd.f32 %v1760_v30, %v171_v24 }
 0x12c   :  { %v278_v36 = vadd.f32 %v270_v31, %v2520_v32 }
 0x12d   :  { %v1866_v27 = vpop.f32.mrb[2].mxu0  ;;  %322 = vrot.lane.b32.xlu1 %v316_v25, %s2361_s5  ;;  %320 = vrot.lane.b32.xlu0 %v315_v26, %s2361_s5  ;;  %v277_v41 = vadd.f32 %v265_v20, %v2524_v35 }
 0x12e   :  { %v181_v28 = vpop.f32.mrb[3].mxu0  ;;  %v2527_v37 = vadd.f32 %v1866_v27, %v1760_v30  ;;  %v1766_v40 = vmul.f32 -1.442695, %v278_v36 }
 0x12f   :  { %v2522_v33 = vadd.f32 %v1760_v30, %v181_v28  ;;  %v1765_v44 = vmul.f32 -1.442695, %v277_v41 }
 0x130   :  { %v280_v43 = vadd.f32 %v272_v39, %v2527_v37  ;;  %2040 = vpow2.f32 %v1766_v40 }
 0x131   :  { %318 = vrot.lane.b32.xlu1 %v313_v22, %s2361_s5  ;;  %324 = vrot.lane.b32.xlu0 %v317_v29, %s2361_s5  ;;  %v279_v38 = vadd.f32 %v271_v34, %v2522_v33 }
 0x132   :  { %v1768_v45 = vmul.f32 -1.442695, %v280_v43 }
 0x133   :  { %v1767_v42 = vmul.f32 -1.442695, %v279_v38 }
 0x135   :  { %2042 = vpow2.f32 %v1767_v42 }
 0x136   :  { %2044 = vpow2.f32 %v1765_v44 }
 0x137   :  { %2046 = vpow2.f32 %v1768_v45 }
 0x13a   :  { %v2041_v46 = vpop.eup %2040 }
 0x13b   :  { %v294_v48 = vadd.f32 1.0, %v2041_v46 }
 0x13d   :  { %2048 = vrcp.f32 %v294_v48 }
 0x13f   :  { %v2043_v47 = vpop.eup %2042 }
 0x140   :  { %v2045_v49 = vpop.eup %2044  ;;  %v295_v50 = vadd.f32 1.0, %v2043_v47 }
 0x141   :  { %v2047_v51 = vpop.eup %2046  ;;  %v293_v52 = vadd.f32 1.0, %v2045_v49 }
 0x142   :  { %2050 = vrcp.f32 %v295_v50  ;;  %v296_v53 = vadd.f32 1.0, %v2047_v51 }
 0x143   :  { %2052 = vrcp.f32 %v293_v52 }
 0x144   :  { %2054 = vrcp.f32 %v296_v53 }
 0x147   :  { %v2049_v55 = vpop.eup %2048 }
 0x14c   :  { %v2051_v56 = vpop.eup %2050 }
 0x14d   :  { %v2053_v61 = vpop.eup %2052 }
 0x14e   :  { %v2055_v62 = vpop.eup %2054 }
 0x19f   :  { %v323_v57 = vpop.permute.xlu1 %322  ;;  %v321_v58 = vpop.permute.xlu0 %320 }
 0x1a0   :  { %v332_v59 = vmul.f32 %v2051_v56, %v323_v57  ;;  %v331_v60 = vmul.f32 %v2049_v55, %v321_v58 }
 0x1a2   :  { %340 = vrot.lane.b32.xlu1 %v331_v60, %s2360_s19  ;;  %342 = vrot.lane.b32.xlu0 %v332_v59, %s2360_s19  ;;  %v2363_v60 = vmov 1  }
 0x1a3   :  { %v319_v63 = vpop.permute.xlu1 %318  ;;  %v325_v2 = vpop.permute.xlu0 %324 }
 0x1a4   :  { %v330_v3 = vmul.f32 %v2053_v61, %v319_v63  ;;  %v333_v4 = vmul.f32 %v2055_v62, %v325_v2 }
 0x1a6   :  { %344 = vrot.lane.b32.xlu0 %v333_v4, %s2360_s19  ;;  %338 = vrot.lane.b32.xlu1 %v330_v3, %s2360_s19 }
 0x1aa   :  { %360 = vperm.xlu1 %2031, %v2536_v5  }
 0x1ae   :  { %2032 = vset.pattern.permute.xlu1 %v2363_v60 }
 0x214   :  { %v341_v6 = vpop.permute.xlu1 %340  ;;  %v343_v7 = vpop.permute.xlu0 %342 }
 0x215   :  { %v351_v8 = vadd.f32 %v341_v6, %v2520_v32  ;;  %v352_v10 = vadd.f32 %v343_v7, %v2522_v33 }
 0x217   :  { %2056 = vtanh.f32 %v351_v8 }
 0x218   :  { %v345_v11 = vpop.permute.xlu0 %344  ;;  %v339_v12 = vpop.permute.xlu1 %338  ;;  %2058 = vtanh.f32 %v352_v10 }
 0x219   :  { %v353_v13 = vadd.f32 %v345_v11, %v2527_v37  ;;  %v350_v15 = vadd.f32 %v339_v12, %v2524_v35 }
 0x21b   :  { %2060 = vtanh.f32 %v353_v13 }
 0x21c   :  { %2062 = vtanh.f32 %v350_v15 }
 0x221   :  { %v2057_v16 = vpop.eup %2056 }
 0x222   :  { %v2059_v17 = vpop.eup %2058  ;;  %v367_v20 = vrot.slane %v2057_v16, 7 }
 0x223   :  { %v370_v22 = vrot.slane %v2059_v17, 6 }
 0x225   :  { %v2061_v18 = vpop.eup %2060 }
 0x226   :  { %v2063_v21 = vpop.eup %2062  ;;  %v373_v23 = vrot.slane %v2061_v18, 5 }
 0x227   :  { %v369_v24 = vsel %vm368_vm2, %v367_v20, %v2063_v21 }
 0x228   :  { %v372_v25 = vsel %vm371_vm3, %v370_v22, %v369_v24 }
 0x229   :  { %v375_v26 = vsel %vm374_vm4, %v373_v23, %v372_v25  ;;  %v361_v27 = vpop.permute.xlu1 %360 }
 0x22a   :  { %376 = vrot.lane.b32.xlu0 %v375_v26, %s2361_s5 }
 0x29c   :  { %v377_v28 = vpop.permute.xlu0 %376 }
 0x29d   :  { %v2547_v29 = vmul.f32 %v377_v28, %v361_v27 }
 0x29f   :  { %1887 = vmatmul.mubr.msk.f32.vlgmr.msra.gmra.mrb[4].mxu0 %vm92_vm1, %v2547_v29  ;;  %v536_v12 = vrot.slane %v2547_v29, 1  ;;  %v535_v13 = vrot.slane %v2547_v29, 7  ;;  %v537_v15 = vrot.slane %v2547_v29, 2 }
 0x2a0   :  { %1983 = vmatpush3.bf16.msra.mxu0 %v2480_v9  ;;  %1908 = vmatprep.mubr.msk.f32.mxu0 %vm2358_vm0, %v2359_v1 }
 0x2a1   :  { %1984 = vmatprep.subr.bf16.mxu0 %v2357_v0 }
 0x2a4   :  { %1986 = vmatpush3.bf16.msra.mxu0 %v2484_v14 }
 0x2a5   :  { %1993 = vmatprep.subr.bf16.mxu0 %v2357_v0 }
 0x372   :  { %v450_v30 = vpop.f32.mrb[4].mxu0 }
 0x373   :  { %v1888_v31 = vpop.f32.mrb[5].mxu0  ;;  %v490_v34 = vadd.f32 %v450_v30, %v2510_v19  ;;  %v455_v40 = vrot.slane %v450_v30, 7  ;;  %v456_v41 = vrot.slane %v450_v30, 1  ;;  %v457_v43 = vrot.slane %v450_v30, 2 }
 0x374   :  { %v463_v45 = vadd.f32 %v450_v30, %v2520_v32 }
 0x375   :  { %v493_v36 = vrot.slane %v490_v34, 1  ;;  %v492_v38 = vrot.slane %v490_v34, 7  ;;  %v494_v39 = vrot.slane %v490_v34, 2  ;;  %v462_v42 = vadd.f32 %v455_v40, %v2524_v35 }
 0x376   :  { %v464_v44 = vadd.f32 %v456_v41, %v2522_v33  ;;  %v465_v47 = vadd.f32 %v457_v43, %v2527_v37  ;;  %v1772_v49 = vmul.f32 -1.442695, %v463_v45 }
 0x377   :  { %499 = vrot.lane.b32.xlu0 %v493_v36, %s2361_s5  ;;  %495 = vrot.lane.b32.xlu1 %v492_v38, %s2361_s5  ;;  %v1771_v46 = vmul.f32 -1.442695, %v462_v42 }
 0x378   :  { %v1773_v48 = vmul.f32 -1.442695, %v464_v44  ;;  %v1774_v50 = vmul.f32 -1.442695, %v465_v47 }
 0x379   :  { %2064 = vpow2.f32 %v1771_v46 }
 0x37a   :  { %2066 = vpow2.f32 %v1773_v48 }
 0x37b   :  { %501 = vrot.lane.b32.xlu0 %v494_v39, %s2361_s5  ;;  %497 = vrot.lane.b32.xlu1 %v490_v34, %s2361_s5  ;;  %2068 = vpow2.f32 %v1772_v49 }
 0x37c   :  { %2070 = vpow2.f32 %v1774_v50 }
 0x383   :  { %v2065_v51 = vpop.eup %2064 }
 0x384   :  { %v2067_v52 = vpop.eup %2066  ;;  %v478_v53 = vadd.f32 1.0, %v2065_v51 }
 0x385   :  { %v2069_v54 = vpop.eup %2068  ;;  %v480_v55 = vadd.f32 1.0, %v2067_v52 }
 0x386   :  { %v2071_v56 = vpop.eup %2070  ;;  %2072 = vrcp.f32 %v478_v53  ;;  %v479_v57 = vadd.f32 1.0, %v2069_v54 }
 0x387   :  { %2074 = vrcp.f32 %v480_v55  ;;  %v481_v58 = vadd.f32 1.0, %v2071_v56 }
 0x388   :  { %2076 = vrcp.f32 %v479_v57 }
 0x389   :  { %2078 = vrcp.f32 %v481_v58 }
 0x390   :  { %v2073_v59 = vpop.eup %2072 }
 0x391   :  { %v2075_v61 = vpop.eup %2074 }
 0x392   :  { %v2077_v4 = vpop.eup %2076 }
 0x393   :  { %v2079_v6 = vpop.eup %2078 }
 0x3e9   :  { %v500_v62 = vpop.permute.xlu0 %499  ;;  %v496_v63 = vpop.permute.xlu1 %495 }
 0x3ea   :  { %v509_v2 = vmul.f32 %v2075_v61, %v500_v62  ;;  %v507_v3 = vmul.f32 %v2073_v59, %v496_v63 }
 0x3ec   :  { %519 = vrot.lane.b32.xlu0 %v509_v2, %s2360_s19  ;;  %515 = vrot.lane.b32.xlu1 %v507_v3, %s2360_s19 }
 0x3ed   :  { %v502_v7 = vpop.permute.xlu0 %501  ;;  %v498_v8 = vpop.permute.xlu1 %497 }
 0x3ee   :  { %v510_v10 = vmul.f32 %v2079_v6, %v502_v7  ;;  %v508_v11 = vmul.f32 %v2077_v4, %v498_v8 }
 0x3f0   :  { %521 = vrot.lane.b32.xlu0 %v510_v10, %s2360_s19  ;;  %517 = vrot.lane.b32.xlu1 %v508_v11, %s2360_s19 }
 0x3f4   :  { %542 = vrot.lane.b32.xlu0 %v536_v12, %s2360_s19  ;;  %538 = vrot.lane.b32.xlu1 %v535_v13, %s2360_s19 }
 0x3f8   :  { %544 = vrot.lane.b32.xlu0 %v537_v15, %s2360_s19  ;;  %540 = vrot.lane.b32.xlu1 %v2547_v29, %s2360_s19 }
 0x3fc   :  { %555 = vperm.xlu1 %2032, %v2536_v5  }
 0x45e   :  { %v520_v16 = vpop.permute.xlu0 %519  ;;  %v516_v17 = vpop.permute.xlu1 %515 }
 0x45f   :  { %v529_v18 = vadd.f32 %v520_v16, %v2522_v33  ;;  %v527_v20 = vadd.f32 %v516_v17, %v2524_v35 }
 0x461   :  { %2080 = vtanh.f32 %v529_v18  ;;  %v2364_v18 = vmov 2  }
 0x462   :  { %2082 = vtanh.f32 %v527_v20  ;;  %v522_v21 = vpop.permute.xlu0 %521  ;;  %v518_v22 = vpop.permute.xlu1 %517  ;;  %2033 = vset.pattern.permute.xlu1 %v2364_v18 }
 0x463   :  { %v530_v23 = vadd.f32 %v522_v21, %v2527_v37  ;;  %v528_v24 = vadd.f32 %v518_v22, %v2520_v32 }
 0x465   :  { %2084 = vtanh.f32 %v530_v23 }
 0x466   :  { %2086 = vtanh.f32 %v528_v24  ;;  %v543_v25 = vpop.permute.xlu0 %542  ;;  %v539_v26 = vpop.permute.xlu1 %538 }
 0x46a   :  { %v545_v36 = vpop.permute.xlu0 %544  ;;  %v541_v40 = vpop.permute.xlu1 %540 }
 0x46b   :  { %v2081_v27 = vpop.eup %2080 }
 0x46c   :  { %v2083_v28 = vpop.eup %2082  ;;  %v552_v31 = vsub.f32 %v2081_v27, %v543_v25 }
 0x46d   :  { %v550_v30 = vsub.f32 %v2083_v28, %v539_v26 }
 0x46e   :  { %v564_v43 = vrot.slane %v552_v31, 7 }
 0x46f   :  { %v2085_v34 = vpop.eup %2084  ;;  %v562_v41 = vrot.slane %v550_v30, 1 }
 0x470   :  { %v2087_v38 = vpop.eup %2086  ;;  %v553_v39 = vsub.f32 %v2085_v34, %v545_v36 }
 0x471   :  { %v551_v42 = vsub.f32 %v2087_v38, %v541_v40 }
 0x472   :  { %v566_v44 = vrot.slane %v553_v39, 6 }
 0x473   :  { %v563_v45 = vsel %vm368_vm2, %v551_v42, %v562_v41 }
 0x474   :  { %v565_v46 = vsel %vm371_vm3, %v564_v43, %v563_v45 }
 0x475   :  { %v567_v47 = vsel %vm374_vm4, %v566_v44, %v565_v46 }
 0x476   :  { %568 = vrot.lane.b32.xlu0 %v567_v47, %s2361_s5 }
 0x47b   :  { %v556_v48 = vpop.permute.xlu1 %555 }
 0x4e8   :  { %v569_v49 = vpop.permute.xlu0 %568 }
 0x4e9   :  { %v571_v50 = vmul.f32 %v569_v49, %v556_v48 }
 0x4eb   :  { %v2588_v51 = vadd.f32 %v571_v50, %v2547_v29 }
 0x4ed   :  { %1898 = vmatmul.mubr.msk.f32.vlgmr.msra.gmra.mrb[2].mxu1 %vm92_vm1, %v2588_v51  ;;  %v728_v34 = vrot.slane %v2588_v51, 7  ;;  %v727_v36 = vrot.slane %v2588_v51, 6  ;;  %v729_v38 = vrot.slane %v2588_v51, 1 }
 0x4ee   :  { %1989 = vmatpush3.bf16.msra.mxu1 %v2480_v9  ;;  %1919 = vmatprep.mubr.msk.f32.mxu1 %vm2358_vm0, %v2359_v1 }
 0x4ef   :  { %1990 = vmatprep.subr.bf16.mxu1 %v2357_v0 }
 0x4f2   :  { %1992 = vmatpush3.bf16.msra.mxu1 %v2484_v14 }
 0x4f3   :  { %1999 = vmatprep.subr.bf16.mxu1 %v2357_v0 }
 0x5c0   :  { %v642_v52 = vpop.f32.mrb[2].mxu1 }
 0x5c1   :  { %v1899_v53 = vpop.f32.mrb[3].mxu1  ;;  %v682_v54 = vadd.f32 %v642_v52, %v2510_v19  ;;  %v647_v57 = vrot.slane %v642_v52, 6  ;;  %v648_v58 = vrot.slane %v642_v52, 7  ;;  %v649_v60 = vrot.slane %v642_v52, 1 }
 0x5c2   :  { %v656_v62 = vadd.f32 %v642_v52, %v2522_v33 }
 0x5c3   :  { %v685_v29 = vrot.slane %v682_v54, 7  ;;  %v684_v55 = vrot.slane %v682_v54, 6  ;;  %v686_v56 = vrot.slane %v682_v54, 1  ;;  %v654_v59 = vadd.f32 %v647_v57, %v2524_v35 }
 0x5c4   :  { %v655_v61 = vadd.f32 %v648_v58, %v2520_v32  ;;  %v657_v2 = vadd.f32 %v649_v60, %v2527_v37  ;;  %v1778_v4 = vmul.f32 -1.442695, %v656_v62 }
 0x5c5   :  { %689 = vrot.lane.b32.xlu0 %v685_v29, %s2361_s5  ;;  %687 = vrot.lane.b32.xlu1 %v684_v55, %s2361_s5  ;;  %v1776_v63 = vmul.f32 -1.442695, %v654_v59 }
 0x5c6   :  { %v1777_v3 = vmul.f32 -1.442695, %v655_v61  ;;  %v1779_v6 = vmul.f32 -1.442695, %v657_v2 }
 0x5c7   :  { %2088 = vpow2.f32 %v1776_v63 }
 0x5c8   :  { %2090 = vpow2.f32 %v1777_v3 }
 0x5c9   :  { %691 = vrot.lane.b32.xlu0 %v682_v54, %s2361_s5  ;;  %693 = vrot.lane.b32.xlu1 %v686_v56, %s2361_s5  ;;  %2092 = vpow2.f32 %v1778_v4 }
 0x5ca   :  { %2094 = vpow2.f32 %v1779_v6 }
 0x5d1   :  { %v2089_v7 = vpop.eup %2088 }
 0x5d2   :  { %v2091_v8 = vpop.eup %2090  ;;  %v670_v10 = vadd.f32 1.0, %v2089_v7 }
 0x5d3   :  { %v2093_v11 = vpop.eup %2092  ;;  %v671_v12 = vadd.f32 1.0, %v2091_v8 }
 0x5d4   :  { %v2095_v13 = vpop.eup %2094  ;;  %2096 = vrcp.f32 %v670_v10  ;;  %v672_v15 = vadd.f32 1.0, %v2093_v11 }
 0x5d5   :  { %2098 = vrcp.f32 %v671_v12  ;;  %v673_v16 = vadd.f32 1.0, %v2095_v13 }
 0x5d6   :  { %2100 = vrcp.f32 %v672_v15 }
 0x5d7   :  { %2102 = vrcp.f32 %v673_v16 }
 0x5de   :  { %v2097_v17 = vpop.eup %2096 }
 0x5df   :  { %v2099_v20 = vpop.eup %2098 }
 0x5e0   :  { %v2101_v25 = vpop.eup %2100 }
 0x5e1   :  { %v2103_v26 = vpop.eup %2102 }
 0x637   :  { %v690_v21 = vpop.permute.xlu0 %689  ;;  %v688_v22 = vpop.permute.xlu1 %687 }
 0x638   :  { %v700_v23 = vmul.f32 %v2099_v20, %v690_v21  ;;  %v699_v24 = vmul.f32 %v2097_v17, %v688_v22 }
 0x63a   :  { %709 = vrot.lane.b32.xlu0 %v700_v23, %s2360_s19  ;;  %707 = vrot.lane.b32.xlu1 %v699_v24, %s2360_s19 }
 0x63b   :  { %v692_v27 = vpop.permute.xlu0 %691  ;;  %v694_v28 = vpop.permute.xlu1 %693 }
 0x63c   :  { %v701_v30 = vmul.f32 %v2101_v25, %v692_v27  ;;  %v702_v31 = vmul.f32 %v2103_v26, %v694_v28 }
 0x63e   :  { %711 = vrot.lane.b32.xlu0 %v701_v30, %s2360_s19  ;;  %713 = vrot.lane.b32.xlu1 %v702_v31, %s2360_s19 }
 0x642   :  { %732 = vrot.lane.b32.xlu0 %v728_v34, %s2360_s19  ;;  %730 = vrot.lane.b32.xlu1 %v727_v36, %s2360_s19 }
 0x646   :  { %734 = vrot.lane.b32.xlu0 %v2588_v51, %s2360_s19  ;;  %736 = vrot.lane.b32.xlu1 %v729_v38, %s2360_s19 }
 0x64a   :  { %747 = vperm.xlu1 %2033, %v2536_v5  }
 0x6ac   :  { %v710_v39 = vpop.permute.xlu0 %709  ;;  %v708_v40 = vpop.permute.xlu1 %707 }
 0x6ad   :  { %v720_v41 = vadd.f32 %v710_v39, %v2520_v32  ;;  %v719_v42 = vadd.f32 %v708_v40, %v2524_v35 }
 0x6af   :  { %2104 = vtanh.f32 %v720_v41 }
 0x6b0   :  { %2106 = vtanh.f32 %v719_v42  ;;  %v712_v43 = vpop.permute.xlu0 %711  ;;  %v714_v44 = vpop.permute.xlu1 %713 }
 0x6b1   :  { %v721_v45 = vadd.f32 %v712_v43, %v2522_v33  ;;  %v722_v46 = vadd.f32 %v714_v44, %v2527_v37  ;;  %v2365_v44 = vmov 3  }
 0x6b2   :  { %2034 = vset.pattern.permute.xlu1 %v2365_v44 }
 0x6b3   :  { %2108 = vtanh.f32 %v721_v45 }
 0x6b4   :  { %2110 = vtanh.f32 %v722_v46  ;;  %v733_v47 = vpop.permute.xlu0 %732  ;;  %v731_v48 = vpop.permute.xlu1 %730 }
 0x6b8   :  { %v735_v56 = vpop.permute.xlu0 %734  ;;  %v737_v59 = vpop.permute.xlu1 %736 }
 0x6b9   :  { %v2105_v49 = vpop.eup %2104 }
 0x6ba   :  { %v2107_v50 = vpop.eup %2106  ;;  %v743_v52 = vsub.f32 %v2105_v49, %v733_v47 }
 0x6bb   :  { %v742_v53 = vsub.f32 %v2107_v50, %v731_v48 }
 0x6bc   :  { %v755_v54 = vrot.slane %v743_v52, 1 }
 0x6bd   :  { %v2109_v29 = vpop.eup %2108  ;;  %v754_v55 = vrot.slane %v742_v53, 2 }
 0x6be   :  { %v2111_v57 = vpop.eup %2110  ;;  %v744_v58 = vsub.f32 %v2109_v29, %v735_v56 }
 0x6bf   :  { %v756_v60 = vsel %vm368_vm2, %v755_v54, %v754_v55  ;;  %v745_v61 = vsub.f32 %v2111_v57, %v737_v59 }
 0x6c0   :  { %v757_v62 = vsel %vm371_vm3, %v744_v58, %v756_v60 }
 0x6c1   :  { %v758_v63 = vrot.slane %v745_v61, 7 }
 0x6c3   :  { %v759_v2 = vsel %vm374_vm4, %v758_v63, %v757_v62 }
 0x6c4   :  { %760 = vrot.lane.b32.xlu0 %v759_v2, %s2361_s5 }
 0x6c9   :  { %v748_v3 = vpop.permute.xlu1 %747 }
 0x736   :  { %v761_v4 = vpop.permute.xlu0 %760 }
 0x737   :  { %v763_v6 = vmul.f32 %v761_v4, %v748_v3 }
 0x739   :  { %v2629_v7 = vadd.f32 %v763_v6, %v2588_v51 }
 0x73b   :  { %1909 = vmatmul.mubr.msk.f32.vlgmr.msra.gmra.mrb[6].mxu0 %vm92_vm1, %v2629_v7  ;;  %v920_v54 = vrot.slane %v2629_v7, 6  ;;  %v919_v29 = vrot.slane %v2629_v7, 5  ;;  %v921_v55 = vrot.slane %v2629_v7, 7 }
 0x73c   :  { %1995 = vmatpush3.bf16.msra.mxu0 %v2480_v9  ;;  %1930 = vmatprep.mubr.msk.f32.mxu0 %vm2358_vm0, %v2359_v1 }
 0x73d   :  { %1996 = vmatprep.subr.bf16.mxu0 %v2357_v0 }
 0x740   :  { %1998 = vmatpush3.bf16.msra.mxu0 %v2484_v14 }
 0x741   :  { %2005 = vmatprep.subr.bf16.mxu0 %v2357_v0 }
 0x80e   :  { %v834_v8 = vpop.f32.mrb[6].mxu0 }
 0x80f   :  { %v1910_v10 = vpop.f32.mrb[7].mxu0  ;;  %v874_v11 = vadd.f32 %v834_v8, %v2510_v19  ;;  %v839_v15 = vrot.slane %v834_v8, 5  ;;  %v840_v16 = vrot.slane %v834_v8, 6  ;;  %v841_v18 = vrot.slane %v834_v8, 7 }
 0x810   :  { %v849_v21 = vadd.f32 %v834_v8, %v2527_v37 }
 0x811   :  { %v877_v51 = vrot.slane %v874_v11, 6  ;;  %v876_v12 = vrot.slane %v874_v11, 5  ;;  %v878_v13 = vrot.slane %v874_v11, 7  ;;  %v846_v17 = vadd.f32 %v839_v15, %v2524_v35 }
 0x812   :  { %v847_v20 = vadd.f32 %v840_v16, %v2520_v32  ;;  %v848_v23 = vadd.f32 %v841_v18, %v2522_v33  ;;  %v1784_v25 = vmul.f32 -1.442695, %v849_v21 }
 0x813   :  { %881 = vrot.lane.b32.xlu0 %v877_v51, %s2361_s5  ;;  %879 = vrot.lane.b32.xlu1 %v876_v12, %s2361_s5  ;;  %v1781_v22 = vmul.f32 -1.442695, %v846_v17 }
 0x814   :  { %v1782_v24 = vmul.f32 -1.442695, %v847_v20  ;;  %v1783_v26 = vmul.f32 -1.442695, %v848_v23 }
 0x815   :  { %2112 = vpow2.f32 %v1781_v22 }
 0x816   :  { %2114 = vpow2.f32 %v1782_v24 }
 0x817   :  { %885 = vrot.lane.b32.xlu0 %v874_v11, %s2361_s5  ;;  %883 = vrot.lane.b32.xlu1 %v878_v13, %s2361_s5  ;;  %2116 = vpow2.f32 %v1784_v25 }
 0x818   :  { %2118 = vpow2.f32 %v1783_v26 }
 0x81f   :  { %v2113_v27 = vpop.eup %2112 }
 0x820   :  { %v2115_v28 = vpop.eup %2114  ;;  %v862_v30 = vadd.f32 1.0, %v2113_v27 }
 0x821   :  { %v2117_v31 = vpop.eup %2116  ;;  %v863_v34 = vadd.f32 1.0, %v2115_v28 }
 0x822   :  { %v2119_v36 = vpop.eup %2118  ;;  %2120 = vrcp.f32 %v862_v30  ;;  %v865_v38 = vadd.f32 1.0, %v2117_v31 }
 0x823   :  { %2122 = vrcp.f32 %v863_v34  ;;  %v864_v39 = vadd.f32 1.0, %v2119_v36 }
 0x824   :  { %2124 = vrcp.f32 %v865_v38 }
 0x825   :  { %2126 = vrcp.f32 %v864_v39 }
 0x82c   :  { %v2121_v40 = vpop.eup %2120 }
 0x82d   :  { %v2123_v41 = vpop.eup %2122 }
 0x82e   :  { %v2125_v47 = vpop.eup %2124 }
 0x82f   :  { %v2127_v48 = vpop.eup %2126 }
 0x885   :  { %v882_v42 = vpop.permute.xlu0 %881  ;;  %v880_v43 = vpop.permute.xlu1 %879 }
 0x886   :  { %v892_v45 = vmul.f32 %v2123_v41, %v882_v42  ;;  %v891_v46 = vmul.f32 %v2121_v40, %v880_v43 }
 0x888   :  { %901 = vrot.lane.b32.xlu0 %v892_v45, %s2360_s19  ;;  %899 = vrot.lane.b32.xlu1 %v891_v46, %s2360_s19 }
 0x889   :  { %v886_v49 = vpop.permute.xlu0 %885  ;;  %v884_v50 = vpop.permute.xlu1 %883 }
 0x88a   :  { %v894_v52 = vmul.f32 %v2125_v47, %v886_v49  ;;  %v893_v53 = vmul.f32 %v2127_v48, %v884_v50 }
 0x88c   :  { %905 = vrot.lane.b32.xlu0 %v894_v52, %s2360_s19  ;;  %903 = vrot.lane.b32.xlu1 %v893_v53, %s2360_s19 }
 0x890   :  { %924 = vrot.lane.b32.xlu0 %v920_v54, %s2360_s19  ;;  %922 = vrot.lane.b32.xlu1 %v919_v29, %s2360_s19 }
 0x894   :  { %928 = vrot.lane.b32.xlu0 %v2629_v7, %s2360_s19  ;;  %926 = vrot.lane.b32.xlu1 %v921_v55, %s2360_s19 }
 0x898   :  { %939 = vperm.xlu1 %2034, %v2536_v5  }
 0x8fa   :  { %v902_v56 = vpop.permute.xlu0 %901  ;;  %v900_v57 = vpop.permute.xlu1 %899 }
 0x8fb   :  { %v912_v58 = vadd.f32 %v902_v56, %v2520_v32  ;;  %v911_v59 = vadd.f32 %v900_v57, %v2524_v35 }
 0x8fd   :  { %2128 = vtanh.f32 %v912_v58 }
 0x8fe   :  { %2130 = vtanh.f32 %v911_v59  ;;  %v906_v60 = vpop.permute.xlu0 %905  ;;  %v904_v61 = vpop.permute.xlu1 %903 }
 0x8ff   :  { %v914_v62 = vadd.f32 %v906_v60, %v2527_v37  ;;  %v913_v63 = vadd.f32 %v904_v61, %v2522_v33 }
 0x901   :  { %2132 = vtanh.f32 %v913_v63 }
 0x902   :  { %2134 = vtanh.f32 %v914_v62  ;;  %v923_v2 = vpop.permute.xlu1 %922  ;;  %v925_v4 = vpop.permute.xlu0 %924 }
 0x906   :  { %v927_v13 = vpop.permute.xlu1 %926  ;;  %v929_v17 = vpop.permute.xlu0 %928 }
 0x907   :  { %v2129_v3 = vpop.eup %2128 }
 0x908   :  { %v2131_v6 = vpop.eup %2130  ;;  %v935_v8 = vsub.f32 %v2129_v3, %v925_v4  ;;  %v2366_v3 = vmov 4  }
 0x909   :  { %v934_v10 = vsub.f32 %v2131_v6, %v923_v2  ;;  %2035 = vset.pattern.permute.xlu1 %v2366_v3 }
 0x90a   :  { %v947_v51 = vrot.slane %v935_v8, 2 }
 0x90b   :  { %v2133_v11 = vpop.eup %2132  ;;  %v946_v12 = vrot.slane %v934_v10, 3 }
 0x90c   :  { %v2135_v15 = vpop.eup %2134  ;;  %v936_v16 = vsub.f32 %v2133_v11, %v927_v13 }
 0x90d   :  { %v948_v20 = vsel %vm368_vm2, %v947_v51, %v946_v12  ;;  %v937_v21 = vsub.f32 %v2135_v15, %v929_v17 }
 0x90e   :  { %v949_v18 = vrot.slane %v936_v16, 1 }
 0x910   :  { %v950_v22 = vsel %vm371_vm3, %v949_v18, %v948_v20 }
 0x911   :  { %v951_v23 = vsel %vm374_vm4, %v937_v21, %v950_v22 }
 0x912   :  { %952 = vrot.lane.b32.xlu0 %v951_v23, %s2361_s5 }
 0x917   :  { %v940_v24 = vpop.permute.xlu1 %939 }
 0x984   :  { %v953_v25 = vpop.permute.xlu0 %952 }
 0x985   :  { %v955_v26 = vmul.f32 %v953_v25, %v940_v24 }
 0x987   :  { %v2670_v27 = vadd.f32 %v955_v26, %v2629_v7 }
 0x989   :  { %1920 = vmatmul.mubr.msk.f32.vlgmr.msra.gmra.mrb[4].mxu1 %vm92_vm1, %v2670_v27  ;;  %v1114_v12 = vrot.slane %v2670_v27, 5  ;;  %v1113_v13 = vrot.slane %v2670_v27, 4  ;;  %v1116_v15 = vrot.slane %v2670_v27, 7  ;;  %v1115_v16 = vrot.slane %v2670_v27, 6 }
 0x98a   :  { %2001 = vmatpush3.bf16.msra.mxu1 %v2480_v9  ;;  %1941 = vmatprep.mubr.msk.f32.mxu1 %vm2358_vm0, %v2359_v1 }
 0x98b   :  { %2002 = vmatprep.subr.bf16.mxu1 %v2357_v0 }
 0x98e   :  { %2004 = vmatpush3.bf16.msra.mxu1 %v2484_v14 }
 0xa5c   :  { %v1026_v28 = vpop.f32.mrb[4].mxu1 }
 0xa5d   :  { %v1921_v30 = vpop.f32.mrb[5].mxu1  ;;  %v1067_v31 = vadd.f32 %v1026_v28, %v2510_v19  ;;  %v1031_v39 = vrot.slane %v1026_v28, 4  ;;  %v1032_v40 = vrot.slane %v1026_v28, 5  ;;  %v1033_v41 = vrot.slane %v1026_v28, 6 }
 0xa5e   :  { %v1034_v43 = vrot.slane %v1026_v28, 7 }
 0xa5f   :  { %v1070_v34 = vrot.slane %v1067_v31, 5  ;;  %v1069_v36 = vrot.slane %v1067_v31, 4  ;;  %v1072_v7 = vrot.slane %v1067_v31, 7  ;;  %v1071_v38 = vrot.slane %v1067_v31, 6 }
 0xa60   :  { %v1039_v42 = vadd.f32 %v1031_v39, %v2524_v35  ;;  %v1040_v44 = vadd.f32 %v1032_v40, %v2520_v32  ;;  %v1041_v45 = vadd.f32 %v1033_v41, %v2522_v33  ;;  %v1042_v47 = vadd.f32 %v1034_v43, %v2527_v37 }
 0xa61   :  { %1075 = vrot.lane.b32.xlu0 %v1070_v34, %s2361_s5  ;;  %1073 = vrot.lane.b32.xlu1 %v1069_v36, %s2361_s5 }
 0xa62   :  { %v1786_v46 = vmul.f32 -1.442695, %v1039_v42  ;;  %v1787_v48 = vmul.f32 -1.442695, %v1040_v44  ;;  %v1788_v49 = vmul.f32 -1.442695, %v1041_v45 }
 0xa63   :  { %v1789_v50 = vmul.f32 -1.442695, %v1042_v47 }
 0xa64   :  { %2136 = vpow2.f32 %v1786_v46 }
 0xa65   :  { %1079 = vrot.lane.b32.xlu0 %v1072_v7, %s2361_s5  ;;  %1077 = vrot.lane.b32.xlu1 %v1071_v38, %s2361_s5  ;;  %2138 = vpow2.f32 %v1787_v48 }
 0xa66   :  { %2140 = vpow2.f32 %v1788_v49 }
 0xa67   :  { %2142 = vpow2.f32 %v1789_v50 }
 0xa6e   :  { %v2137_v52 = vpop.eup %2136 }
 0xa6f   :  { %v2139_v53 = vpop.eup %2138  ;;  %v1055_v54 = vadd.f32 1.0, %v2137_v52 }
 0xa70   :  { %v2141_v29 = vpop.eup %2140  ;;  %v1056_v55 = vadd.f32 1.0, %v2139_v53 }
 0xa71   :  { %v2143_v56 = vpop.eup %2142  ;;  %2144 = vrcp.f32 %v1055_v54  ;;  %v1057_v57 = vadd.f32 1.0, %v2141_v29 }
 0xa72   :  { %2146 = vrcp.f32 %v1056_v55  ;;  %v1058_v58 = vadd.f32 1.0, %v2143_v56 }
 0xa73   :  { %2148 = vrcp.f32 %v1057_v57 }
 0xa74   :  { %2150 = vrcp.f32 %v1058_v58 }
 0xa7b   :  { %v2145_v59 = vpop.eup %2144 }
 0xa7c   :  { %v2147_v60 = vpop.eup %2146 }
 0xa7d   :  { %v2149_v4 = vpop.eup %2148 }
 0xa7e   :  { %v2151_v6 = vpop.eup %2150 }
 0xad3   :  { %v1076_v61 = vpop.permute.xlu0 %1075  ;;  %v1074_v62 = vpop.permute.xlu1 %1073 }
 0xad4   :  { %v1086_v63 = vmul.f32 %v2147_v60, %v1076_v61  ;;  %v1085_v2 = vmul.f32 %v2145_v59, %v1074_v62 }
 0xad6   :  { %1095 = vrot.lane.b32.xlu0 %v1086_v63, %s2360_s19  ;;  %1093 = vrot.lane.b32.xlu1 %v1085_v2, %s2360_s19 }
 0xad7   :  { %v1080_v8 = vpop.permute.xlu0 %1079  ;;  %v1078_v10 = vpop.permute.xlu1 %1077 }
 0xad8   :  { %v1088_v11 = vmul.f32 %v2151_v6, %v1080_v8  ;;  %v1087_v51 = vmul.f32 %v2149_v4, %v1078_v10 }
 0xada   :  { %1099 = vrot.lane.b32.xlu0 %v1088_v11, %s2360_s19  ;;  %1097 = vrot.lane.b32.xlu1 %v1087_v51, %s2360_s19 }
 0xade   :  { %1119 = vrot.lane.b32.xlu0 %v1114_v12, %s2360_s19  ;;  %1117 = vrot.lane.b32.xlu1 %v1113_v13, %s2360_s19 }
 0xae2   :  { %1123 = vrot.lane.b32.xlu0 %v1116_v15, %s2360_s19  ;;  %1121 = vrot.lane.b32.xlu1 %v1115_v16, %s2360_s19 }
 0xae6   :  { %1134 = vperm.xlu1 %2035, %v2536_v5  }
 0xb48   :  { %v1096_v17 = vpop.permute.xlu0 %1095  ;;  %v1094_v18 = vpop.permute.xlu1 %1093 }
 0xb49   :  { %v1106_v20 = vadd.f32 %v1096_v17, %v2520_v32  ;;  %v1105_v21 = vadd.f32 %v1094_v18, %v2524_v35 }
 0xb4b   :  { %2152 = vtanh.f32 %v1106_v20 }
 0xb4c   :  { %2154 = vtanh.f32 %v1105_v21  ;;  %v1100_v22 = vpop.permute.xlu0 %1099  ;;  %v1098_v23 = vpop.permute.xlu1 %1097 }
 0xb4d   :  { %v1108_v24 = vadd.f32 %v1100_v22, %v2527_v37  ;;  %v1107_v25 = vadd.f32 %v1098_v23, %v2522_v33  ;;  %v2367_v23 = vmov 5  }
 0xb4e   :  { %2036 = vset.pattern.permute.xlu1 %v2367_v23 }
 0xb4f   :  { %2156 = vtanh.f32 %v1108_v24 }
 0xb50   :  { %2158 = vtanh.f32 %v1107_v25  ;;  %v1120_v26 = vpop.permute.xlu0 %1119  ;;  %v1118_v28 = vpop.permute.xlu1 %1117 }
 0xb54   :  { %v1124_v7 = vpop.permute.xlu0 %1123  ;;  %v1122_v42 = vpop.permute.xlu1 %1121 }
 0xb55   :  { %v2153_v30 = vpop.eup %2152 }
 0xb56   :  { %v2155_v5 = vpop.eup %2154  ;;  %v1130_v31 = vsub.f32 %v2153_v30, %v1120_v26 }
 0xb57   :  { %v1129_v34 = vsub.f32 %v2155_v5, %v1118_v28 }
 0xb58   :  { %v1142_v39 = vrot.slane %v1130_v31, 3 }
 0xb59   :  { %v2157_v36 = vpop.eup %2156  ;;  %v1141_v40 = vrot.slane %v1129_v34, 4 }
 0xb5a   :  { %v2159_v38 = vpop.eup %2158  ;;  %v1132_v41 = vsub.f32 %v2157_v36, %v1124_v7 }
 0xb5b   :  { %v1131_v43 = vsub.f32 %v2159_v38, %v1122_v42  ;;  %v1143_v46 = vsel %vm368_vm2, %v1142_v39, %v1141_v40  ;;  %v2740_v38 = vld [vmem:[#allocation5] sm:$0xf] }
 0xb5c   :  { %v1146_v44 = vrot.slane %v1132_v41, 1 }
 0xb5d   :  { %v1144_v45 = vrot.slane %v1131_v43, 2 }
 0xb5f   :  { %v1145_v47 = vsel %vm371_vm3, %v1144_v45, %v1143_v46 }
 0xb60   :  { %v1147_v48 = vsel %vm374_vm4, %v1146_v44, %v1145_v47 }
 0xb61   :  { %1148 = vrot.lane.b32.xlu0 %v1147_v48, %s2361_s5 }
 0xb65   :  { %v1135_v49 = vpop.permute.xlu1 %1134 }
 0xbd3   :  { %v1149_v50 = vpop.permute.xlu0 %1148 }
 0xbd4   :  { %v1151_v52 = vmul.f32 %v1149_v50, %v1135_v49 }
 0xbd6   :  { %v2710_v53 = vadd.f32 %v1151_v52, %v2670_v27 }
 0xbd8   :  { %1931 = vmatmul.mubr.msk.f32.vlgmr.msra.gmra.mrb[8].mxu0 %vm92_vm1, %v2710_v53  ;;  %v1310_v31 = vrot.slane %v2710_v53, 4  ;;  %v1309_v34 = vrot.slane %v2710_v53, 3  ;;  %v1312_v36 = vrot.slane %v2710_v53, 6  ;;  %v1311_v7 = vrot.slane %v2710_v53, 5 }
 0xbd9   :  { %2007 = vmatpush3.bf16.msra.mxu0 %v2480_v9  ;;  %1952 = vmatprep.mubr.msk.f32.mxu0 %vm2358_vm0, %v2359_v1 }
 0xbda   :  { %2008 = vmatprep.subr.bf16.mxu0 %v2357_v0 }
 0xbdd   :  { %2010 = vmatpush3.bf16.msra.mxu0 %v2484_v14 }
 0xcab   :  { %v1222_v54 = vpop.f32.mrb[8].mxu0 }
 0xcac   :  { %v1932_v29 = vpop.f32.mrb[9].mxu0  ;;  %v1263_v55 = vadd.f32 %v1222_v54, %v2510_v19  ;;  %v1227_v1 = vrot.slane %v1222_v54, 3  ;;  %v1228_v0 = vrot.slane %v1222_v54, 4  ;;  %v1229_v9 = vrot.slane %v1222_v54, 5 }
 0xcad   :  { %v1230_v59 = vrot.slane %v1222_v54, 6 }
 0xcae   :  { %v1266_v56 = vrot.slane %v1263_v55, 4  ;;  %v1265_v57 = vrot.slane %v1263_v55, 3  ;;  %v1268_v27 = vrot.slane %v1263_v55, 6  ;;  %v1267_v58 = vrot.slane %v1263_v55, 5 }
 0xcaf   :  { %v1235_v14 = vadd.f32 %v1227_v1, %v2524_v35  ;;  %v1236_v60 = vadd.f32 %v1228_v0, %v2520_v32  ;;  %v1237_v61 = vadd.f32 %v1229_v9, %v2522_v33  ;;  %v1238_v63 = vadd.f32 %v1230_v59, %v2527_v37 }
 0xcb0   :  { %1271 = vrot.lane.b32.xlu0 %v1266_v56, %s2361_s5  ;;  %1269 = vrot.lane.b32.xlu1 %v1265_v57, %s2361_s5 }
 0xcb1   :  { %v1791_v62 = vmul.f32 -1.442695, %v1235_v14  ;;  %v1792_v2 = vmul.f32 -1.442695, %v1236_v60  ;;  %v1793_v3 = vmul.f32 -1.442695, %v1237_v61 }
 0xcb2   :  { %v1794_v4 = vmul.f32 -1.442695, %v1238_v63 }
 0xcb3   :  { %2160 = vpow2.f32 %v1791_v62 }
 0xcb4   :  { %1275 = vrot.lane.b32.xlu0 %v1268_v27, %s2361_s5  ;;  %1273 = vrot.lane.b32.xlu1 %v1267_v58, %s2361_s5  ;;  %2162 = vpow2.f32 %v1792_v2 }
 0xcb5   :  { %2164 = vpow2.f32 %v1793_v3 }
 0xcb6   :  { %2166 = vpow2.f32 %v1794_v4 }
 0xcbd   :  { %v2161_v6 = vpop.eup %2160 }
 0xcbe   :  { %v2163_v8 = vpop.eup %2162  ;;  %v1251_v10 = vadd.f32 1.0, %v2161_v6 }
 0xcbf   :  { %v2165_v11 = vpop.eup %2164  ;;  %v1252_v51 = vadd.f32 1.0, %v2163_v8 }
 0xcc0   :  { %v2167_v12 = vpop.eup %2166  ;;  %2168 = vrcp.f32 %v1251_v10  ;;  %v1253_v13 = vadd.f32 1.0, %v2165_v11 }
 0xcc1   :  { %2170 = vrcp.f32 %v1252_v51  ;;  %v1254_v15 = vadd.f32 1.0, %v2167_v12 }
 0xcc2   :  { %2172 = vrcp.f32 %v1253_v13 }
 0xcc3   :  { %2174 = vrcp.f32 %v1254_v15 }
 0xcca   :  { %v2169_v16 = vpop.eup %2168 }
 0xccb   :  { %v2171_v17 = vpop.eup %2170 }
 0xccc   :  { %v2173_v24 = vpop.eup %2172 }
 0xccd   :  { %v2175_v25 = vpop.eup %2174 }
 0xd22   :  { %v1272_v18 = vpop.permute.xlu0 %1271  ;;  %v1270_v20 = vpop.permute.xlu1 %1269 }
 0xd23   :  { %v1282_v21 = vmul.f32 %v2171_v17, %v1272_v18  ;;  %v1281_v22 = vmul.f32 %v2169_v16, %v1270_v20 }
 0xd25   :  { %1291 = vrot.lane.b32.xlu0 %v1282_v21, %s2360_s19  ;;  %1289 = vrot.lane.b32.xlu1 %v1281_v22, %s2360_s19 }
 0xd26   :  { %v1276_v26 = vpop.permute.xlu0 %1275  ;;  %v1274_v28 = vpop.permute.xlu1 %1273 }
 0xd27   :  { %v1284_v30 = vmul.f32 %v2175_v25, %v1276_v26  ;;  %v1283_v5 = vmul.f32 %v2173_v24, %v1274_v28 }
 0xd29   :  { %1295 = vrot.lane.b32.xlu0 %v1284_v30, %s2360_s19  ;;  %1293 = vrot.lane.b32.xlu1 %v1283_v5, %s2360_s19 }
 0xd2d   :  { %1315 = vrot.lane.b32.xlu0 %v1310_v31, %s2360_s19  ;;  %1313 = vrot.lane.b32.xlu1 %v1309_v34, %s2360_s19 }
 0xd31   :  { %1319 = vrot.lane.b32.xlu0 %v1312_v36, %s2360_s19  ;;  %1317 = vrot.lane.b32.xlu1 %v1311_v7, %s2360_s19 }
 0xd35   :  { %1330 = vperm.xlu1 %2036, %v2740_v38  }
 0xd97   :  { %v1292_v39 = vpop.permute.xlu0 %1291  ;;  %v1290_v40 = vpop.permute.xlu1 %1289 }
 0xd98   :  { %v1302_v41 = vadd.f32 %v1292_v39, %v2520_v32  ;;  %v1301_v42 = vadd.f32 %v1290_v40, %v2524_v35 }
 0xd9a   :  { %2176 = vtanh.f32 %v1302_v41 }
 0xd9b   :  { %2178 = vtanh.f32 %v1301_v42  ;;  %v1296_v43 = vpop.permute.xlu0 %1295  ;;  %v1294_v44 = vpop.permute.xlu1 %1293 }
 0xd9c   :  { %v1304_v45 = vadd.f32 %v1296_v43, %v2527_v37  ;;  %v1303_v46 = vadd.f32 %v1294_v44, %v2522_v33 }
 0xd9e   :  { %2180 = vtanh.f32 %v1304_v45  ;;  %v2368_v45 = vmov 6  }
 0xd9f   :  { %2182 = vtanh.f32 %v1303_v46  ;;  %v1316_v47 = vpop.permute.xlu0 %1315  ;;  %v1314_v48 = vpop.permute.xlu1 %1313  ;;  %2037 = vset.pattern.permute.xlu1 %v2368_v45 }
 0xda3   :  { %v1320_v55 = vpop.permute.xlu0 %1319  ;;  %v1318_v1 = vpop.permute.xlu1 %1317 }
 0xda4   :  { %v2177_v49 = vpop.eup %2176 }
 0xda5   :  { %v2179_v50 = vpop.eup %2178  ;;  %v1326_v52 = vsub.f32 %v2177_v49, %v1316_v47 }
 0xda6   :  { %v1325_v54 = vsub.f32 %v2179_v50, %v1314_v48 }
 0xda7   :  { %v1338_v57 = vrot.slane %v1326_v52, 4 }
 0xda8   :  { %v2181_v29 = vpop.eup %2180  ;;  %v1337_v27 = vrot.slane %v1325_v54, 5 }
 0xda9   :  { %v2183_v56 = vpop.eup %2182  ;;  %v1328_v58 = vsub.f32 %v2181_v29, %v1320_v55 }
 0xdaa   :  { %v1327_v0 = vsub.f32 %v2183_v56, %v1318_v1  ;;  %v1339_v59 = vsel %vm368_vm2, %v1338_v57, %v1337_v27 }
 0xdab   :  { %v1342_v9 = vrot.slane %v1328_v58, 2 }
 0xdac   :  { %v1340_v14 = vrot.slane %v1327_v0, 3 }
 0xdae   :  { %v1341_v60 = vsel %vm371_vm3, %v1340_v14, %v1339_v59 }
 0xdaf   :  { %v1343_v61 = vsel %vm374_vm4, %v1342_v9, %v1341_v60 }
 0xdb0   :  { %1344 = vrot.lane.b32.xlu0 %v1343_v61, %s2361_s5 }
 0xdb4   :  { %v1331_v62 = vpop.permute.xlu1 %1330 }
 0xe22   :  { %v1345_v63 = vpop.permute.xlu0 %1344 }
 0xe23   :  { %v1347_v2 = vmul.f32 %v1345_v63, %v1331_v62 }
 0xe25   :  { %v2752_v3 = vadd.f32 %v1347_v2, %v2710_v53 }
 0xe27   :  { %1942 = vmatmul.mubr.msk.f32.vlgmr.msra.gmra.mrb[6].mxu1 %vm92_vm1, %v2752_v3  ;;  %v1506_v54 = vrot.slane %v2752_v3, 3  ;;  %v1505_v29 = vrot.slane %v2752_v3, 2  ;;  %v1508_v55 = vrot.slane %v2752_v3, 5  ;;  %v1507_v56 = vrot.slane %v2752_v3, 4 }
 0xefa   :  { %v1418_v4 = vpop.f32.mrb[6].mxu1 }
 0xefb   :  { %v1943_v6 = vpop.f32.mrb[7].mxu1  ;;  %v1459_v8 = vadd.f32 %v1418_v4, %v2510_v19  ;;  %v1423_v53 = vrot.slane %v1418_v4, 2  ;;  %v1424_v13 = vrot.slane %v1418_v4, 3  ;;  %v1425_v15 = vrot.slane %v1418_v4, 4 }
 0xefc   :  { %v1426_v17 = vrot.slane %v1418_v4, 5 }
 0xefd   :  { %v1462_v10 = vrot.slane %v1459_v8, 3  ;;  %v1461_v11 = vrot.slane %v1459_v8, 2  ;;  %v1464_v51 = vrot.slane %v1459_v8, 5  ;;  %v1463_v12 = vrot.slane %v1459_v8, 4 }
 0xefe   :  { %v1431_v16 = vadd.f32 %v1423_v53, %v2524_v35  ;;  %v1432_v18 = vadd.f32 %v1424_v13, %v2520_v32  ;;  %v1433_v20 = vadd.f32 %v1425_v15, %v2522_v33  ;;  %v1434_v22 = vadd.f32 %v1426_v17, %v2527_v37 }
 0xeff   :  { %1467 = vrot.lane.b32.xlu0 %v1462_v10, %s2361_s5  ;;  %1465 = vrot.lane.b32.xlu1 %v1461_v11, %s2361_s5 }
 0xf00   :  { %v1796_v21 = vmul.f32 -1.442695, %v1431_v16  ;;  %v1797_v23 = vmul.f32 -1.442695, %v1432_v18  ;;  %v1798_v24 = vmul.f32 -1.442695, %v1433_v20 }
 0xf01   :  { %v1799_v25 = vmul.f32 -1.442695, %v1434_v22 }
 0xf02   :  { %2184 = vpow2.f32 %v1796_v21 }
 0xf03   :  { %1471 = vrot.lane.b32.xlu0 %v1464_v51, %s2361_s5  ;;  %1469 = vrot.lane.b32.xlu1 %v1463_v12, %s2361_s5  ;;  %2186 = vpow2.f32 %v1797_v23 }
 0xf04   :  { %2188 = vpow2.f32 %v1798_v24 }
 0xf05   :  { %2190 = vpow2.f32 %v1799_v25 }
 0xf0c   :  { %v2185_v26 = vpop.eup %2184 }
 0xf0d   :  { %v2187_v28 = vpop.eup %2186  ;;  %v1447_v30 = vadd.f32 1.0, %v2185_v26 }
 0xf0e   :  { %v2189_v5 = vpop.eup %2188  ;;  %v1448_v31 = vadd.f32 1.0, %v2187_v28 }
 0xf0f   :  { %v2191_v34 = vpop.eup %2190  ;;  %2192 = vrcp.f32 %v1447_v30  ;;  %v1449_v36 = vadd.f32 1.0, %v2189_v5 }
 0xf10   :  { %2194 = vrcp.f32 %v1448_v31  ;;  %v1450_v7 = vadd.f32 1.0, %v2191_v34 }
 0xf11   :  { %2196 = vrcp.f32 %v1449_v36 }
 0xf12   :  { %2198 = vrcp.f32 %v1450_v7 }
 0xf19   :  { %v2193_v39 = vpop.eup %2192 }
 0xf1a   :  { %v2195_v40 = vpop.eup %2194 }
 0xf1b   :  { %v2197_v46 = vpop.eup %2196 }
 0xf1c   :  { %v2199_v47 = vpop.eup %2198 }
 0xf71   :  { %v1468_v41 = vpop.permute.xlu0 %1467  ;;  %v1466_v42 = vpop.permute.xlu1 %1465 }
 0xf72   :  { %v1478_v43 = vmul.f32 %v2195_v40, %v1468_v41  ;;  %v1477_v44 = vmul.f32 %v2193_v39, %v1466_v42 }
 0xf74   :  { %1487 = vrot.lane.b32.xlu0 %v1478_v43, %s2360_s19  ;;  %1485 = vrot.lane.b32.xlu1 %v1477_v44, %s2360_s19 }
 0xf75   :  { %v1472_v48 = vpop.permute.xlu0 %1471  ;;  %v1470_v49 = vpop.permute.xlu1 %1469 }
 0xf76   :  { %v1480_v50 = vmul.f32 %v2199_v47, %v1472_v48  ;;  %v1479_v52 = vmul.f32 %v2197_v46, %v1470_v49 }
 0xf78   :  { %1491 = vrot.lane.b32.xlu0 %v1480_v50, %s2360_s19  ;;  %1489 = vrot.lane.b32.xlu1 %v1479_v52, %s2360_s19 }
 0xf7c   :  { %1511 = vrot.lane.b32.xlu0 %v1506_v54, %s2360_s19  ;;  %1509 = vrot.lane.b32.xlu1 %v1505_v29, %s2360_s19 }
 0xf80   :  { %1515 = vrot.lane.b32.xlu0 %v1508_v55, %s2360_s19  ;;  %1513 = vrot.lane.b32.xlu1 %v1507_v56, %s2360_s19 }
 0xf84   :  { %1526 = vperm.xlu1 %2037, %v2740_v38  }
 0xfe6   :  { %v1488_v57 = vpop.permute.xlu0 %1487  ;;  %v1486_v27 = vpop.permute.xlu1 %1485 }
 0xfe7   :  { %v1498_v58 = vadd.f32 %v1488_v57, %v2520_v32  ;;  %v1497_v1 = vadd.f32 %v1486_v27, %v2524_v35 }
 0xfe9   :  { %2200 = vtanh.f32 %v1498_v58 }
 0xfea   :  { %2202 = vtanh.f32 %v1497_v1  ;;  %v1492_v0 = vpop.permute.xlu0 %1491  ;;  %v1490_v9 = vpop.permute.xlu1 %1489 }
 0xfeb   :  { %v1500_v14 = vadd.f32 %v1492_v0, %v2527_v37  ;;  %v1499_v59 = vadd.f32 %v1490_v9, %v2522_v33  ;;  %v2369_v9 = vmov 7  }
 0xfec   :  { %2038 = vset.pattern.permute.xlu1 %v2369_v9  ;;  %2039 = vset.pattern.permute.xlu0 %v2369_v9 }
 0xfed   :  { %2204 = vtanh.f32 %v1500_v14 }
 0xfee   :  { %2206 = vtanh.f32 %v1499_v59  ;;  %v1512_v60 = vpop.permute.xlu0 %1511  ;;  %v1510_v61 = vpop.permute.xlu1 %1509 }
 0xff2   :  { %v1516_v8 = vpop.permute.xlu0 %1515  ;;  %v1514_v53 = vpop.permute.xlu1 %1513 }
 0xff3   :  { %v2201_v62 = vpop.eup %2200 }
 0xff4   :  { %v2203_v63 = vpop.eup %2202  ;;  %v1522_v2 = vsub.f32 %v2201_v62, %v1512_v60 }
 0xff5   :  { %v1521_v4 = vsub.f32 %v2203_v63, %v1510_v61 }
 0xff6   :  { %v1534_v11 = vrot.slane %v1522_v2, 5 }
 0xff7   :  { %v2205_v6 = vpop.eup %2204  ;;  %v1533_v51 = vrot.slane %v1521_v4, 6 }
 0xff8   :  { %v2207_v10 = vpop.eup %2206  ;;  %v1524_v12 = vsub.f32 %v2205_v6, %v1516_v8 }
 0xff9   :  { %v1523_v13 = vsub.f32 %v2207_v10, %v1514_v53  ;;  %v1535_v17 = vsel %vm368_vm2, %v1534_v11, %v1533_v51 }
 0xffa   :  { %v1538_v15 = vrot.slane %v1524_v12, 3 }
 0xffb   :  { %v1536_v16 = vrot.slane %v1523_v13, 4 }
 0xffd   :  { %v1537_v18 = vsel %vm371_vm3, %v1536_v16, %v1535_v17 }
 0xffe   :  { %v1539_v20 = vsel %vm374_vm4, %v1538_v15, %v1537_v18 }
 0xfff   :  { %1540 = vrot.lane.b32.xlu0 %v1539_v20, %s2361_s5 }
0x1003   :  { %v1527_v21 = vpop.permute.xlu1 %1526 }
0x1071   :  { %v1541_v22 = vpop.permute.xlu0 %1540 }
0x1072   :  { %v1543_v23 = vmul.f32 %v1541_v22, %v1527_v21 }
0x1074   :  { %v2787_v24 = vadd.f32 %v1543_v23, %v2752_v3 }
0x1076   :  { %1953 = vmatmul.mubr.msk.f32.vlgmr.msra.gmra.mrb[10].mxu0 %vm92_vm1, %v2787_v24  ;;  %v1702_v2 = vrot.slane %v2787_v24, 2  ;;  %v1701_v4 = vrot.slane %v2787_v24, 1  ;;  %v1704_v6 = vrot.slane %v2787_v24, 4  ;;  %v1703_v8 = vrot.slane %v2787_v24, 3 }
0x1149   :  { %v1614_v25 = vpop.f32.mrb[10].mxu0 }
0x114a   :  { %v1954_v26 = vpop.f32.mrb[11].mxu0  ;;  %v1655_v28 = vadd.f32 %v1614_v25, %v2510_v19  ;;  %v1619_v3 = vrot.slane %v1614_v25, 1  ;;  %v1620_v36 = vrot.slane %v1614_v25, 2  ;;  %v1621_v7 = vrot.slane %v1614_v25, 3 }
0x114b   :  { %v1622_v40 = vrot.slane %v1614_v25, 4 }
0x114c   :  { %v1658_v30 = vrot.slane %v1655_v28, 2  ;;  %v1657_v5 = vrot.slane %v1655_v28, 1  ;;  %v1660_v31 = vrot.slane %v1655_v28, 4  ;;  %v1659_v34 = vrot.slane %v1655_v28, 3 }
0x114d   :  { %v1627_v39 = vadd.f32 %v1619_v3, %v2524_v35  ;;  %v1628_v19 = vadd.f32 %v1620_v36, %v2520_v32  ;;  %v1629_v41 = vadd.f32 %v1621_v7, %v2522_v33  ;;  %v1630_v43 = vadd.f32 %v1622_v40, %v2527_v37 }
0x114e   :  { %1663 = vrot.lane.b32.xlu0 %v1658_v30, %s2361_s5  ;;  %1661 = vrot.lane.b32.xlu1 %v1657_v5, %s2361_s5 }
0x114f   :  { %v1801_v42 = vmul.f32 -1.442695, %v1627_v39  ;;  %v1802_v44 = vmul.f32 -1.442695, %v1628_v19  ;;  %v1803_v45 = vmul.f32 -1.442695, %v1629_v41 }
0x1150   :  { %v1804_v46 = vmul.f32 -1.442695, %v1630_v43 }
0x1151   :  { %2208 = vpow2.f32 %v1801_v42 }
0x1152   :  { %1667 = vrot.lane.b32.xlu0 %v1660_v31, %s2361_s5  ;;  %1665 = vrot.lane.b32.xlu1 %v1659_v34, %s2361_s5  ;;  %2210 = vpow2.f32 %v1802_v44 }
0x1153   :  { %2212 = vpow2.f32 %v1803_v45 }
0x1154   :  { %2214 = vpow2.f32 %v1804_v46 }
0x115b   :  { %v2209_v47 = vpop.eup %2208 }
0x115c   :  { %v2211_v48 = vpop.eup %2210  ;;  %v1643_v49 = vadd.f32 1.0, %v2209_v47 }
0x115d   :  { %v2213_v50 = vpop.eup %2212  ;;  %v1644_v52 = vadd.f32 1.0, %v2211_v48 }
0x115e   :  { %v2215_v54 = vpop.eup %2214  ;;  %2216 = vrcp.f32 %v1643_v49  ;;  %v1645_v29 = vadd.f32 1.0, %v2213_v50 }
0x115f   :  { %2218 = vrcp.f32 %v1644_v52  ;;  %v1646_v55 = vadd.f32 1.0, %v2215_v54 }
0x1160   :  { %2220 = vrcp.f32 %v1645_v29 }
0x1161   :  { %2222 = vrcp.f32 %v1646_v55 }
0x1168   :  { %v2217_v56 = vpop.eup %2216 }
0x1169   :  { %v2219_v57 = vpop.eup %2218 }
0x116a   :  { %v2221_v14 = vpop.eup %2220 }
0x116b   :  { %v2223_v59 = vpop.eup %2222 }
0x11c0   :  { %v1664_v27 = vpop.permute.xlu0 %1663  ;;  %v1662_v58 = vpop.permute.xlu1 %1661 }
0x11c1   :  { %v1674_v1 = vmul.f32 %v2219_v57, %v1664_v27  ;;  %v1673_v0 = vmul.f32 %v2217_v56, %v1662_v58 }
0x11c3   :  { %1683 = vrot.lane.b32.xlu0 %v1674_v1, %s2360_s19  ;;  %1681 = vrot.lane.b32.xlu1 %v1673_v0, %s2360_s19 }
0x11c4   :  { %v1668_v60 = vpop.permute.xlu0 %1667  ;;  %v1666_v61 = vpop.permute.xlu1 %1665 }
0x11c5   :  { %v1676_v62 = vmul.f32 %v2223_v59, %v1668_v60  ;;  %v1675_v63 = vmul.f32 %v2221_v14, %v1666_v61 }
0x11c7   :  { %1687 = vrot.lane.b32.xlu0 %v1676_v62, %s2360_s19  ;;  %1685 = vrot.lane.b32.xlu1 %v1675_v63, %s2360_s19 }
0x11cb   :  { %1707 = vrot.lane.b32.xlu0 %v1702_v2, %s2360_s19  ;;  %1705 = vrot.lane.b32.xlu1 %v1701_v4, %s2360_s19 }
0x11cf   :  { %1711 = vrot.lane.b32.xlu0 %v1704_v6, %s2360_s19  ;;  %1709 = vrot.lane.b32.xlu1 %v1703_v8, %s2360_s19 }
0x11d3   :  { %1722 = vperm.xlu1 %2038, %v2740_v38  }
0x1235   :  { %v1684_v10 = vpop.permute.xlu0 %1683  ;;  %v1682_v11 = vpop.permute.xlu1 %1681 }
0x1236   :  { %v1694_v51 = vadd.f32 %v1684_v10, %v2520_v32  ;;  %v1693_v12 = vadd.f32 %v1682_v11, %v2524_v35 }
0x1238   :  { %2224 = vtanh.f32 %v1694_v51 }
0x1239   :  { %2226 = vtanh.f32 %v1693_v12  ;;  %v1688_v53 = vpop.permute.xlu0 %1687  ;;  %v1686_v13 = vpop.permute.xlu1 %1685 }
0x123a   :  { %v1696_v15 = vadd.f32 %v1688_v53, %v2527_v37  ;;  %v1695_v16 = vadd.f32 %v1686_v13, %v2522_v33 }
0x123c   :  { %2228 = vtanh.f32 %v1696_v15 }
0x123d   :  { %2230 = vtanh.f32 %v1695_v16  ;;  %v1708_v17 = vpop.permute.xlu0 %1707  ;;  %v1706_v18 = vpop.permute.xlu1 %1705 }
0x1241   :  { %v1712_v32 = vpop.permute.xlu0 %1711  ;;  %v1710_v30 = vpop.permute.xlu1 %1709 }
0x1242   :  { %v2225_v20 = vpop.eup %2224 }
0x1243   :  { %v2227_v38 = vpop.eup %2226  ;;  %v1718_v21 = vsub.f32 %v2225_v20, %v1708_v17 }
0x1244   :  { %v1717_v22 = vsub.f32 %v2227_v38, %v1706_v18 }
0x1245   :  { %v1730_v35 = vrot.slane %v1718_v21, 6 }
0x1246   :  { %v2229_v23 = vpop.eup %2228  ;;  %v1729_v26 = vrot.slane %v1717_v22, 7 }
0x1247   :  { %v2231_v25 = vpop.eup %2230  ;;  %v1720_v28 = vsub.f32 %v2229_v23, %v1712_v32 }
0x1248   :  { %v1719_v5 = vsub.f32 %v2231_v25, %v1710_v30  ;;  %v1731_v33 = vsel %vm368_vm2, %v1730_v35, %v1729_v26 }
0x1249   :  { %v1734_v31 = vrot.slane %v1720_v28, 4 }
0x124a   :  { %v1732_v37 = vrot.slane %v1719_v5, 5 }
0x124c   :  { %v1733_v34 = vsel %vm371_vm3, %v1732_v37, %v1731_v33 }
0x124d   :  { %v1735_v3 = vsel %vm374_vm4, %v1734_v31, %v1733_v34 }
0x124e   :  { %1736 = vrot.lane.b32.xlu0 %v1735_v3, %s2361_s5 }
0x1252   :  { %v1723_v36 = vpop.permute.xlu1 %1722 }
0x12c0   :  { %v1737_v7 = vpop.permute.xlu0 %1736 }
0x12c1   :  { %v1739_v39 = vmul.f32 %v1737_v7, %v1723_v36 }
0x12c3   :  { %v1740_v40 = vadd.f32 %v1739_v39, %v2787_v24 }
0x12c5   :  { %1742 = vst.msk [vmem:[#allocation10] sm:$0xf] %vm1741_vm5, %v1740_v40 }
0x12c6   :  { %2332 = shalt.err (!%p2329_p8)
}
0x12c7   :  { %s2333_s28 = scalar_lea.hbm %s2840_s6, 64 }
0x12c8   :  { %p2334_p9 = scmp.ne.s32.totalorder %s2840_s6, %s2333_s28  ;;  %p2337_p10 = scmp.lt.u32.totalorder %s2333_s28, %s2840_s6 }
0x12ca   :  { %p2339_p11 = pnand %p2337_p10, %p2334_p9 }
0x12cc   :  { %2342 = shalt.err (!%p2339_p11)
}
0x12cd   :  { %1752 = dma.vmem_to_hbm [thread:$0]  %s1750_s23, 64, %s2840_s6, [#allocation4]  }
0x12ce   :  { %2349 = dma.done.wait [#allocation4], 64  }
0x12cf   :  { %2350 = vsyncadd [#allocation4], 4294967232 }
0x12d0   :  { %1756 = vsyncpa [#allocation3], 1 }
0x12d1   :  { %1757 = vsyncpa [#allocation6], 1 }
0x12d2   :  { %1758 = vsyncpa [#allocation9], 1 }
0x12d3   :  { %1759 = vsyncpa [#allocation4], 1 }

</bundles_post_ra>
